<compile_context>
chip_gen: v7x
topology: tpu7x:2x2x1
jax: 0.10.0
libtpu: 0.0.40
codegen_flags: <defaults>
</compile_context>

<pallas_src>
import functools
import math

import jax
import jax.numpy as jnp
from jax.experimental import pallas as pl
from jax.experimental.pallas import tpu as pltpu


# ---------------------------------------------------------------------------
# Fused Pallas kernel (one grid step == one batch element)
# ---------------------------------------------------------------------------
def _fused_koopman_kernel(n_enc, n_dec, n_zact_rest, T, target_k, *refs):
    """refs layout (inputs):
         x_ref                      (Tp, Dp)  f32, one batch element
         encoder:   n_enc           (W bf16, b f32) pairs
         decoder:   n_dec           (W bf16, b f32) pairs
         z_act L0:  W0a, W0b, W0c   (Dp, H) bf16 blocks of the split concat
                    b0              (1, H) f32
         z_act rest: n_zact_rest    (W bf16, b f32) pairs
         act_decoder: Wact bf16, bact f32
         koopman:   (1, Lp) f32
       refs layout (outputs):
         zx_out (Tp, Lp), xrec_out (Tp, Dp),
         apred_out (T-2, Ap), pred_out (T-2, Lp)     all f32
    """
    idx = 0
    x_ref = refs[idx]; idx += 1
    enc = [(refs[idx + 2 * l], refs[idx + 2 * l + 1]) for l in range(n_enc)]
    idx += 2 * n_enc
    dec = [(refs[idx + 2 * l], refs[idx + 2 * l + 1]) for l in range(n_dec)]
    idx += 2 * n_dec
    w0a_ref, w0b_ref, w0c_ref, b0_ref = refs[idx:idx + 4]
    idx += 4
    zrest = [(refs[idx + 2 * l], refs[idx + 2 * l + 1]) for l in range(n_zact_rest)]
    idx += 2 * n_zact_rest
    wact_ref, bact_ref = refs[idx:idx + 2]
    idx += 2
    koop_ref = refs[idx]; idx += 1
    zx_out, xrec_out, apred_out, pred_out = refs[idx:idx + 4]

    def run_mlp(h, layers):
        n = len(layers)
        for li, (w_ref, b_ref) in enumerate(layers):
            # bf16 MXU operands, f32 accumulation, f32 bias add / ReLU.
            h = jnp.dot(h.astype(w_ref.dtype), w_ref[...],
                        preferred_element_type=jnp.float32) + b_ref[...]
            if li < n - 1:
                h = jnp.maximum(h, 0.0)
        return h

    # ---- observation autoencoder -----------------------------------------
    x = x_ref[...]                                   # (Tp, Dp) f32
    zx = run_mlp(x, enc)                             # (Tp, Lp) f32
    zx_out[...] = zx
    xrec_out[...] = run_mlp(zx, dec)                 # (Tp, Dp) f32

    # ---- inverse dynamics head: z_act(concat(prev, curr, target)) ---------
    # The first layer's weight is split into three Dp-wide blocks, so
    # concat(prev, curr, tgt) @ W0  ==  prev@W0a + curr@W0b + tgt@W0c.
    bf = w0a_ref.dtype
    x_prev = x[0:T - 2, :].astype(bf)                # (T-2, Dp)
    x_curr = x[1:T - 1, :].astype(bf)                # (T-2, Dp)
    h = (jnp.dot(x_prev, w0a_ref[...], preferred_element_type=jnp.float32)
         + jnp.dot(x_curr, w0b_ref[...], preferred_element_type=jnp.float32))

    if target_k == -1:
        # Target is the last frame: compute its contribution once, broadcast.
        tgt_h = jnp.dot(x[T - 1:T, :].astype(bf), w0c_ref[...],
                        preferred_element_type=jnp.float32)       # (1, H)
    else:
        # target index for row t is min(t + k, T-1): a contiguous shifted
        # slice followed by (possibly zero) repeats of the last frame.
        count = max(0, min(T - 2, T - target_k))
        parts = []
        if count > 0:
            parts.append(jnp.dot(x[target_k:target_k + count, :].astype(bf),
                                 w0c_ref[...],
                                 preferred_element_type=jnp.float32))
        if count < T - 2:
            last = jnp.dot(x[T - 1:T, :].astype(bf), w0c_ref[...],
                           preferred_element_type=jnp.float32)
            parts.append(jnp.broadcast_to(last, (T - 2 - count, last.shape[1])))
        tgt_h = parts[0] if len(parts) == 1 else jnp.concatenate(parts, axis=0)

    h = h + tgt_h + b0_ref[...]
    if n_zact_rest > 0:
        h = jnp.maximum(h, 0.0)
    idm_za = run_mlp(h, zrest) if zrest else h       # (T-2, Lp) f32

    # ---- action decoder + Koopman rollout ---------------------------------
    apred_out[...] = (jnp.dot(idm_za.astype(wact_ref.dtype), wact_ref[...],
                              preferred_element_type=jnp.float32)
                      + bact_ref[...])
    # zx_current (== zx[:, 1:-1, :]) is just a row slice of the zx block.
    pred_out[...] = zx[1:T - 1, :] * koop_ref[...] + idm_za


# ---------------------------------------------------------------------------
# Helpers
# ---------------------------------------------------------------------------
def _round_up(v, m=128):
    return ((v + m - 1) // m) * m


def _pad_matrix(w, rows, cols, dtype=None):
    dtype = dtype or w.dtype
    out = jnp.zeros((rows, cols), dtype)
    return out.at[: w.shape[0], : w.shape[1]].set(w.astype(dtype))


def masked_input_dim(input_dim, mask_dim):
    if len(mask_dim) == 1:
        return input_dim - mask_dim[0]
    elif len(mask_dim) == 2:
        return input_dim - (mask_dim[1] - mask_dim[0])
    elif len(mask_dim) > 2:
        masked = 0
        for i in range(0, len(mask_dim), 2):
            masked += mask_dim[i + 1] - mask_dim[i]
        return input_dim - masked
    return input_dim


# ---------------------------------------------------------------------------
# Parameter construction (padded, weights in bf16, biases/koopman in f32)
# ---------------------------------------------------------------------------
def _init_linear(key, fan_in, fan_out):
    key, kw = jax.random.split(key)
    # kaiming_normal_(mode='fan_out', relu); bias = 0 (mirrors _initialize_weights)
    w = jax.random.normal(kw, (fan_in, fan_out), jnp.float32) * jnp.sqrt(2.0 / fan_out)
    b = jnp.zeros((fan_out,), jnp.float32)
    return (w, b), key


def _init_padded_mlp(key, dims, w_dtype=jnp.bfloat16):
    layers = []
    for i in range(len(dims) - 1):
        (w, b), key = _init_linear(key, dims[i], dims[i + 1])
        wp = _pad_matrix(w, _round_up(dims[i]), _round_up(dims[i + 1]), w_dtype)
        bp = _pad_matrix(b.reshape(1, -1), 1, _round_up(dims[i + 1]), jnp.float32)
        layers.append((wp, bp))
    return layers, key


def init_params(key, input_dim, action_dim, hidden_dims, latent_dim):
    D, L, A = input_dim, latent_dim, action_dim
    p = {}
    p["enc"], key = _init_padded_mlp(key, [D] + list(hidden_dims) + [L])
    p["dec"], key = _init_padded_mlp(key, [L] + list(hidden_dims) + [D])

    # z_act = MLPNetwork(3*D, [256, 256], L); first layer split into three
    # D-wide blocks so the kernel never needs an in-VMEM concat.
    zdims = [3 * D, 256, 256, L]
    (w0, b0), key = _init_linear(key, zdims[0], zdims[1])
    Dp, Hp = _round_up(D), _round_up(zdims[1])
    p["zact_first"] = (
        _pad_matrix(w0[0:D, :], Dp, Hp, jnp.bfloat16),
        _pad_matrix(w0[D:2 * D, :], Dp, Hp, jnp.bfloat16),
        _pad_matrix(w0[2 * D:3 * D, :], Dp, Hp, jnp.bfloat16),
        _pad_matrix(b0.reshape(1, -1), 1, Hp, jnp.float32),
    )
    p["zact_rest"], key = _init_padded_mlp(key, zdims[1:])

    # act_decoder: Linear(L, A)
    (wa, ba), key = _init_linear(key, L, A)
    p["act"] = (_pad_matrix(wa, _round_up(L), _round_up(A), jnp.bfloat16),
                _pad_matrix(ba.reshape(1, -1), 1, _round_up(A), jnp.float32))

    # koopman: Parameter(torch.randn(latent_dim))
    key, kk = jax.random.split(key)
    koop = jax.random.normal(kk, (L,), jnp.float32)
    p["koopman"] = _pad_matrix(koop.reshape(1, -1), 1, _round_up(L), jnp.float32)
    return p, key


# ---------------------------------------------------------------------------
# Forward pass (layout plumbing in JAX; all math in one Pallas kernel)
# ---------------------------------------------------------------------------
def koopman_forward(params, x, *, input_dim, action_dim, latent_dim, target_k=-1):
    B, T, D = x.shape
    assert D == input_dim and T >= 3
    assert target_k == -1 or target_k >= 0

    enc, dec = params["enc"], params["dec"]
    w0a, w0b, w0c, b0 = params["zact_first"]
    zact_rest = params["zact_rest"]
    wact, bact = params["act"]
    koop = params["koopman"]

    Dp = enc[0][0].shape[0]
    Lp = koop.shape[1]
    Ap = wact.shape[1]
    Tp = ((T + 7) // 8) * 8

    # Single padded input (feature dim -> 128-multiple, time -> 8-multiple).
    xpad = jnp.pad(x.astype(jnp.float32), ((0, 0), (0, Tp - T), (0, Dp - D)))

    weight_inputs = []
    for w, b in enc:
        weight_inputs += [w, b]
    for w, b in dec:
        weight_inputs += [w, b]
    weight_inputs += [w0a, w0b, w0c, b0]
    for w, b in zact_rest:
        weight_inputs += [w, b]
    weight_inputs += [wact, bact, koop]

    # One batch element per grid step; weights resident (constant block index).
    x_spec = pl.BlockSpec((None, Tp, Dp), lambda b: (b, 0, 0))
    w_specs = [pl.BlockSpec(w.shape, lambda b: (0, 0)) for w in weight_inputs]

    out_shapes = (
        jax.ShapeDtypeStruct((B, Tp, Lp), jnp.float32),      # zx (padded)
        jax.ShapeDtypeStruct((B, Tp, Dp), jnp.float32),      # x_recon (padded)
        jax.ShapeDtypeStruct((B, T - 2, Ap), jnp.float32),   # a_pred (padded lanes)
        jax.ShapeDtypeStruct((B, T - 2, Lp), jnp.float32),   # pred_zx_prime
    )
    out_specs = (
        pl.BlockSpec((None, Tp, Lp), lambda b: (b, 0, 0)),
        pl.BlockSpec((None, Tp, Dp), lambda b: (b, 0, 0)),
        pl.BlockSpec((None, T - 2, Ap), lambda b: (b, 0, 0)),
        pl.BlockSpec((None, T - 2, Lp), lambda b: (b, 0, 0)),
    )

    # Advisory cost estimate so XLA can overlap wrapper pad/slice ops.
    def _mlp_flops(rows, layers):
        return sum(2 * rows * w.shape[0] * w.shape[1] for w, _ in layers)

    def _nbytes(shape, dtype):
        return int(math.prod(shape)) * jnp.dtype(dtype).itemsize

    tgt_rows = 1 if target_k == -1 else (T - 2)
    flops = B * (_mlp_flops(Tp, enc) + _mlp_flops(Tp, dec)
                 + 2 * (T - 2) * w0a.shape[0] * w0a.shape[1] * 2
                 + 2 * tgt_rows * w0c.shape[0] * w0c.shape[1]
                 + _mlp_flops(T - 2, zact_rest)
                 + 2 * (T - 2) * wact.shape[0] * wact.shape[1])
    bytes_accessed = (sum(_nbytes(a.shape, a.dtype) for a in weight_inputs)
                      + _nbytes((B, Tp, Dp), jnp.float32)
                      + sum(_nbytes(s.shape, s.dtype) for s in out_shapes))
    cost = pl.CostEstimate(flops=int(flops), transcendentals=0,
                           bytes_accessed=int(bytes_accessed))

    kernel = functools.partial(
        _fused_koopman_kernel, len(enc), len(dec), len(zact_rest), T, target_k)

    zx_p, xrec_p, apred_p, pred_p = pl.pallas_call(
        kernel,
        out_shape=out_shapes,
        grid=(B,),
        in_specs=[x_spec] + w_specs,
        out_specs=out_specs,
        compiler_params=pltpu.CompilerParams(
            dimension_semantics=("parallel",)),
        cost_estimate=cost,
    )(xpad, *weight_inputs)

    # Slice padded outputs back to logical shapes.
    L, A = latent_dim, action_dim
    zx = zx_p[:, :T, :L]
    x_recon = xrec_p[:, :T, :D]
    a_pred = apred_p[:, :, :A]
    pred_zx_prime = pred_p[:, :, :L]
    zx_prime = zx[:, 2:, :]
    return x_recon, a_pred, zx_prime, pred_zx_prime, zx


# ---------------------------------------------------------------------------
# Main
# ---------------------------------------------------------------------------
if __name__ == "__main__":
    input_dim = 20
    mask_dim = [4]                 # -> effective input dim = 16
    action_dim = 8
    hidden_dims = [32, 32]
    latent_dim = 16
    target_k = -1
    B, T = 2, 8

    eff_dim = masked_input_dim(input_dim, mask_dim)

    key = jax.random.PRNGKey(0)
    params, key = init_params(key, eff_dim, action_dim, hidden_dims, latent_dim)
    key, kx = jax.random.split(key)
    x = jax.random.normal(kx, (B, T, eff_dim), jnp.float32)

    fwd = jax.jit(functools.partial(
        koopman_forward,
        input_dim=eff_dim,
        action_dim=action_dim,
        latent_dim=latent_dim,
        target_k=target_k))

    x_recon, a_pred, zx_prime, pred_zx_prime, zx = fwd(params, x)
    jax.block_until_ready((x_recon, a_pred, zx_prime, pred_zx_prime, zx))

    assert x_recon.shape == (B, T, eff_dim)
    assert a_pred.shape == (B, T - 2, action_dim)
    assert zx_prime.shape == (B, T - 2, latent_dim)
    assert pred_zx_prime.shape == (B, T - 2, latent_dim)
    assert zx.shape == (B, T, latent_dim)
    for a in (x_recon, a_pred, zx_prime, pred_zx_prime, zx):
        assert bool(jnp.all(jnp.isfinite(a)))

    print("KERNEL_OK")
</pallas_src>

<mosaic_0001>
module attributes {stable_mosaic.version = 11 : i64} {
  func.func @_fused_koopman_kernel(%arg0: i32, %arg1: memref<1x8x128xf32, #tpu.memory_space<vmem>>, %arg2: memref<128x128xbf16, #tpu.memory_space<vmem>>, %arg3: memref<1x128xf32, #tpu.memory_space<vmem>>, %arg4: memref<128x128xbf16, #tpu.memory_space<vmem>>, %arg5: memref<1x128xf32, #tpu.memory_space<vmem>>, %arg6: memref<128x128xbf16, #tpu.memory_space<vmem>>, %arg7: memref<1x128xf32, #tpu.memory_space<vmem>>, %arg8: memref<128x128xbf16, #tpu.memory_space<vmem>>, %arg9: memref<1x128xf32, #tpu.memory_space<vmem>>, %arg10: memref<128x128xbf16, #tpu.memory_space<vmem>>, %arg11: memref<1x128xf32, #tpu.memory_space<vmem>>, %arg12: memref<128x128xbf16, #tpu.memory_space<vmem>>, %arg13: memref<1x128xf32, #tpu.memory_space<vmem>>, %arg14: memref<128x256xbf16, #tpu.memory_space<vmem>>, %arg15: memref<128x256xbf16, #tpu.memory_space<vmem>>, %arg16: memref<128x256xbf16, #tpu.memory_space<vmem>>, %arg17: memref<1x256xf32, #tpu.memory_space<vmem>>, %arg18: memref<256x256xbf16, #tpu.memory_space<vmem>>, %arg19: memref<1x256xf32, #tpu.memory_space<vmem>>, %arg20: memref<256x128xbf16, #tpu.memory_space<vmem>>, %arg21: memref<1x128xf32, #tpu.memory_space<vmem>>, %arg22: memref<128x128xbf16, #tpu.memory_space<vmem>>, %arg23: memref<1x128xf32, #tpu.memory_space<vmem>>, %arg24: memref<1x128xf32, #tpu.memory_space<vmem>>, %arg25: memref<1x8x128xf32, #tpu.memory_space<vmem>>, %arg26: memref<1x8x128xf32, #tpu.memory_space<vmem>>, %arg27: memref<1x6x128xf32, #tpu.memory_space<vmem>>, %arg28: memref<1x6x128xf32, #tpu.memory_space<vmem>>) attributes {dimension_semantics = [#tpu.dimension_semantics<parallel>], iteration_bounds = array<i64: 2>, scalar_prefetch = 0 : i64, scratch_operands = 0 : i64, tpu.core_type = #tpu.core_type<tc>, window_params = [{transform_indices = @transform_0, window_bounds = array<i64: 1, 8, 128>}, {pipeline_mode = #tpu.pipeline_mode<synchronous>, transform_indices = @transform_1, window_bounds = array<i64: 128, 128>}, {pipeline_mode = #tpu.pipeline_mode<synchronous>, transform_indices = @transform_2, window_bounds = array<i64: 1, 128>}, {pipeline_mode = #tpu.pipeline_mode<synchronous>, transform_indices = @transform_3, window_bounds = array<i64: 128, 128>}, {pipeline_mode = #tpu.pipeline_mode<synchronous>, transform_indices = @transform_4, window_bounds = array<i64: 1, 128>}, {pipeline_mode = #tpu.pipeline_mode<synchronous>, transform_indices = @transform_5, window_bounds = array<i64: 128, 128>}, {pipeline_mode = #tpu.pipeline_mode<synchronous>, transform_indices = @transform_6, window_bounds = array<i64: 1, 128>}, {pipeline_mode = #tpu.pipeline_mode<synchronous>, transform_indices = @transform_7, window_bounds = array<i64: 128, 128>}, {pipeline_mode = #tpu.pipeline_mode<synchronous>, transform_indices = @transform_8, window_bounds = array<i64: 1, 128>}, {pipeline_mode = #tpu.pipeline_mode<synchronous>, transform_indices = @transform_9, window_bounds = array<i64: 128, 128>}, {pipeline_mode = #tpu.pipeline_mode<synchronous>, transform_indices = @transform_10, window_bounds = array<i64: 1, 128>}, {pipeline_mode = #tpu.pipeline_mode<synchronous>, transform_indices = @transform_11, window_bounds = array<i64: 128, 128>}, {pipeline_mode = #tpu.pipeline_mode<synchronous>, transform_indices = @transform_12, window_bounds = array<i64: 1, 128>}, {pipeline_mode = #tpu.pipeline_mode<synchronous>, transform_indices = @transform_13, window_bounds = array<i64: 128, 256>}, {pipeline_mode = #tpu.pipeline_mode<synchronous>, transform_indices = @transform_14, window_bounds = array<i64: 128, 256>}, {pipeline_mode = #tpu.pipeline_mode<synchronous>, transform_indices = @transform_15, window_bounds = array<i64: 128, 256>}, {pipeline_mode = #tpu.pipeline_mode<synchronous>, transform_indices = @transform_16, window_bounds = array<i64: 1, 256>}, {pipeline_mode = #tpu.pipeline_mode<synchronous>, transform_indices = @transform_17, window_bounds = array<i64: 256, 256>}, {pipeline_mode = #tpu.pipeline_mode<synchronous>, transform_indices = @transform_18, window_bounds = array<i64: 1, 256>}, {pipeline_mode = #tpu.pipeline_mode<synchronous>, transform_indices = @transform_19, window_bounds = array<i64: 256, 128>}, {pipeline_mode = #tpu.pipeline_mode<synchronous>, transform_indices = @transform_20, window_bounds = array<i64: 1, 128>}, {pipeline_mode = #tpu.pipeline_mode<synchronous>, transform_indices = @transform_21, window_bounds = array<i64: 128, 128>}, {pipeline_mode = #tpu.pipeline_mode<synchronous>, transform_indices = @transform_22, window_bounds = array<i64: 1, 128>}, {pipeline_mode = #tpu.pipeline_mode<synchronous>, transform_indices = @transform_23, window_bounds = array<i64: 1, 128>}, {transform_indices = @transform_24, window_bounds = array<i64: 1, 8, 128>}, {transform_indices = @transform_25, window_bounds = array<i64: 1, 8, 128>}, {transform_indices = @transform_26, window_bounds = array<i64: 1, 6, 128>}, {transform_indices = @transform_27, window_bounds = array<i64: 1, 6, 128>}]} {
    %c0 = arith.constant 0 : index
    %c0_0 = arith.constant 0 : index
    %c0_1 = arith.constant 0 : index
    %0 = vector.load %arg1[%c0, %c0_0, %c0_1] : memref<1x8x128xf32, #tpu.memory_space<vmem>>, vector<1x8x128xf32>
    %1 = vector.shape_cast %0 : vector<1x8x128xf32> to vector<8x128xf32>
    %2 = arith.truncf %1 : vector<8x128xf32> to vector<8x128xbf16>
    %c0_2 = arith.constant 0 : index
    %c0_3 = arith.constant 0 : index
    %3 = vector.load %arg2[%c0_2, %c0_3] : memref<128x128xbf16, #tpu.memory_space<vmem>>, vector<128x128xbf16>
    %cst = arith.constant dense<0.000000e+00> : vector<8x128xf32>
    %4 = tpu.matmul %2, %3, %cst {dimension_numbers = #tpu.dot_dimension_numbers<[1], [0], [0], [1], [0, 0, 1, 1], [], []>} : vector<8x128xbf16>, vector<128x128xbf16>, vector<8x128xf32> -> vector<8x128xf32>
    %c0_4 = arith.constant 0 : index
    %c0_5 = arith.constant 0 : index
    %5 = vector.load %arg3[%c0_4, %c0_5] : memref<1x128xf32, #tpu.memory_space<vmem>>, vector<1x128xf32>
    %6 = vector.broadcast %5 : vector<1x128xf32> to vector<8x128xf32>
    %7 = arith.addf %4, %6 : vector<8x128xf32>
    %cst_6 = arith.constant 0.000000e+00 : f32
    %8 = vector.broadcast %cst_6 : f32 to vector<8x128xf32>
    %9 = arith.maximumf %7, %8 : vector<8x128xf32>
    %10 = arith.truncf %9 : vector<8x128xf32> to vector<8x128xbf16>
    %c0_7 = arith.constant 0 : index
    %c0_8 = arith.constant 0 : index
    %11 = vector.load %arg4[%c0_7, %c0_8] : memref<128x128xbf16, #tpu.memory_space<vmem>>, vector<128x128xbf16>
    %cst_9 = arith.constant dense<0.000000e+00> : vector<8x128xf32>
    %12 = tpu.matmul %10, %11, %cst_9 {dimension_numbers = #tpu.dot_dimension_numbers<[1], [0], [0], [1], [0, 0, 1, 1], [], []>} : vector<8x128xbf16>, vector<128x128xbf16>, vector<8x128xf32> -> vector<8x128xf32>
    %c0_10 = arith.constant 0 : index
    %c0_11 = arith.constant 0 : index
    %13 = vector.load %arg5[%c0_10, %c0_11] : memref<1x128xf32, #tpu.memory_space<vmem>>, vector<1x128xf32>
    %14 = vector.broadcast %13 : vector<1x128xf32> to vector<8x128xf32>
    %15 = arith.addf %12, %14 : vector<8x128xf32>
    %cst_12 = arith.constant 0.000000e+00 : f32
    %16 = vector.broadcast %cst_12 : f32 to vector<8x128xf32>
    %17 = arith.maximumf %15, %16 : vector<8x128xf32>
    %18 = arith.truncf %17 : vector<8x128xf32> to vector<8x128xbf16>
    %c0_13 = arith.constant 0 : index
    %c0_14 = arith.constant 0 : index
    %19 = vector.load %arg6[%c0_13, %c0_14] : memref<128x128xbf16, #tpu.memory_space<vmem>>, vector<128x128xbf16>
    %cst_15 = arith.constant dense<0.000000e+00> : vector<8x128xf32>
    %20 = tpu.matmul %18, %19, %cst_15 {dimension_numbers = #tpu.dot_dimension_numbers<[1], [0], [0], [1], [0, 0, 1, 1], [], []>} : vector<8x128xbf16>, vector<128x128xbf16>, vector<8x128xf32> -> vector<8x128xf32>
    %c0_16 = arith.constant 0 : index
    %c0_17 = arith.constant 0 : index
    %21 = vector.load %arg7[%c0_16, %c0_17] : memref<1x128xf32, #tpu.memory_space<vmem>>, vector<1x128xf32>
    %22 = vector.broadcast %21 : vector<1x128xf32> to vector<8x128xf32>
    %23 = arith.addf %20, %22 : vector<8x128xf32>
    %c0_18 = arith.constant 0 : index
    %c0_19 = arith.constant 0 : index
    %c0_20 = arith.constant 0 : index
    %24 = vector.load %arg25[%c0_18, %c0_19, %c0_20] : memref<1x8x128xf32, #tpu.memory_space<vmem>>, vector<1x8x128xf32>
    %25 = vector.shape_cast %24 : vector<1x8x128xf32> to vector<8x128xf32>
    %26 = vector.shape_cast %23 : vector<8x128xf32> to vector<1x8x128xf32>
    tpu.vector_store %arg25[%c0_18, %c0_19, %c0_20], %26 {strides = array<i32>} : memref<1x8x128xf32, #tpu.memory_space<vmem>>, vector<1x8x128xf32>,
    %27 = arith.truncf %23 : vector<8x128xf32> to vector<8x128xbf16>
    %c0_21 = arith.constant 0 : index
    %c0_22 = arith.constant 0 : index
    %28 = vector.load %arg8[%c0_21, %c0_22] : memref<128x128xbf16, #tpu.memory_space<vmem>>, vector<128x128xbf16>
    %cst_23 = arith.constant dense<0.000000e+00> : vector<8x128xf32>
    %29 = tpu.matmul %27, %28, %cst_23 {dimension_numbers = #tpu.dot_dimension_numbers<[1], [0], [0], [1], [0, 0, 1, 1], [], []>} : vector<8x128xbf16>, vector<128x128xbf16>, vector<8x128xf32> -> vector<8x128xf32>
    %c0_24 = arith.constant 0 : index
    %c0_25 = arith.constant 0 : index
    %30 = vector.load %arg9[%c0_24, %c0_25] : memref<1x128xf32, #tpu.memory_space<vmem>>, vector<1x128xf32>
    %31 = vector.broadcast %30 : vector<1x128xf32> to vector<8x128xf32>
    %32 = arith.addf %29, %31 : vector<8x128xf32>
    %cst_26 = arith.constant 0.000000e+00 : f32
    %33 = vector.broadcast %cst_26 : f32 to vector<8x128xf32>
    %34 = arith.maximumf %32, %33 : vector<8x128xf32>
    %35 = arith.truncf %34 : vector<8x128xf32> to vector<8x128xbf16>
    %c0_27 = arith.constant 0 : index
    %c0_28 = arith.constant 0 : index
    %36 = vector.load %arg10[%c0_27, %c0_28] : memref<128x128xbf16, #tpu.memory_space<vmem>>, vector<128x128xbf16>
    %cst_29 = arith.constant dense<0.000000e+00> : vector<8x128xf32>
    %37 = tpu.matmul %35, %36, %cst_29 {dimension_numbers = #tpu.dot_dimension_numbers<[1], [0], [0], [1], [0, 0, 1, 1], [], []>} : vector<8x128xbf16>, vector<128x128xbf16>, vector<8x128xf32> -> vector<8x128xf32>
    %c0_30 = arith.constant 0 : index
    %c0_31 = arith.constant 0 : index
    %38 = vector.load %arg11[%c0_30, %c0_31] : memref<1x128xf32, #tpu.memory_space<vmem>>, vector<1x128xf32>
    %39 = vector.broadcast %38 : vector<1x128xf32> to vector<8x128xf32>
    %40 = arith.addf %37, %39 : vector<8x128xf32>
    %cst_32 = arith.constant 0.000000e+00 : f32
    %41 = vector.broadcast %cst_32 : f32 to vector<8x128xf32>
    %42 = arith.maximumf %40, %41 : vector<8x128xf32>
    %43 = arith.truncf %42 : vector<8x128xf32> to vector<8x128xbf16>
    %c0_33 = arith.constant 0 : index
    %c0_34 = arith.constant 0 : index
    %44 = vector.load %arg12[%c0_33, %c0_34] : memref<128x128xbf16, #tpu.memory_space<vmem>>, vector<128x128xbf16>
    %cst_35 = arith.constant dense<0.000000e+00> : vector<8x128xf32>
    %45 = tpu.matmul %43, %44, %cst_35 {dimension_numbers = #tpu.dot_dimension_numbers<[1], [0], [0], [1], [0, 0, 1, 1], [], []>} : vector<8x128xbf16>, vector<128x128xbf16>, vector<8x128xf32> -> vector<8x128xf32>
    %c0_36 = arith.constant 0 : index
    %c0_37 = arith.constant 0 : index
    %46 = vector.load %arg13[%c0_36, %c0_37] : memref<1x128xf32, #tpu.memory_space<vmem>>, vector<1x128xf32>
    %47 = vector.broadcast %46 : vector<1x128xf32> to vector<8x128xf32>
    %48 = arith.addf %45, %47 : vector<8x128xf32>
    %c0_38 = arith.constant 0 : index
    %c0_39 = arith.constant 0 : index
    %c0_40 = arith.constant 0 : index
    %49 = vector.load %arg26[%c0_38, %c0_39, %c0_40] : memref<1x8x128xf32, #tpu.memory_space<vmem>>, vector<1x8x128xf32>
    %50 = vector.shape_cast %49 : vector<1x8x128xf32> to vector<8x128xf32>
    %51 = vector.shape_cast %48 : vector<8x128xf32> to vector<1x8x128xf32>
    tpu.vector_store %arg26[%c0_38, %c0_39, %c0_40], %51 {strides = array<i32>} : memref<1x8x128xf32, #tpu.memory_space<vmem>>, vector<1x8x128xf32>,
    %52 = vector.extract_strided_slice %1 {offsets = [0, 0], sizes = [6, 128], strides = [1, 1]} : vector<8x128xf32> to vector<6x128xf32>
    %53 = arith.truncf %52 : vector<6x128xf32> to vector<6x128xbf16>
    %54 = vector.extract_strided_slice %1 {offsets = [1, 0], sizes = [6, 128], strides = [1, 1]} : vector<8x128xf32> to vector<6x128xf32>
    %55 = arith.truncf %54 : vector<6x128xf32> to vector<6x128xbf16>
    %c0_41 = arith.constant 0 : index
    %c0_42 = arith.constant 0 : index
    %56 = vector.load %arg14[%c0_41, %c0_42] : memref<128x256xbf16, #tpu.memory_space<vmem>>, vector<128x256xbf16>
    %cst_43 = arith.constant dense<0.000000e+00> : vector<6x256xf32>
    %57 = tpu.matmul %53, %56, %cst_43 {dimension_numbers = #tpu.dot_dimension_numbers<[1], [0], [0], [1], [0, 0, 1, 1], [], []>} : vector<6x128xbf16>, vector<128x256xbf16>, vector<6x256xf32> -> vector<6x256xf32>
    %c0_44 = arith.constant 0 : index
    %c0_45 = arith.constant 0 : index
    %58 = vector.load %arg15[%c0_44, %c0_45] : memref<128x256xbf16, #tpu.memory_space<vmem>>, vector<128x256xbf16>
    %cst_46 = arith.constant dense<0.000000e+00> : vector<6x256xf32>
    %59 = tpu.matmul %55, %58, %cst_46 {dimension_numbers = #tpu.dot_dimension_numbers<[1], [0], [0], [1], [0, 0, 1, 1], [], []>} : vector<6x128xbf16>, vector<128x256xbf16>, vector<6x256xf32> -> vector<6x256xf32>
    %60 = arith.addf %57, %59 : vector<6x256xf32>
    %61 = vector.extract_strided_slice %1 {offsets = [7, 0], sizes = [1, 128], strides = [1, 1]} : vector<8x128xf32> to vector<1x128xf32>
    %62 = arith.truncf %61 : vector<1x128xf32> to vector<1x128xbf16>
    %c0_47 = arith.constant 0 : index
    %c0_48 = arith.constant 0 : index
    %63 = vector.load %arg16[%c0_47, %c0_48] : memref<128x256xbf16, #tpu.memory_space<vmem>>, vector<128x256xbf16>
    %cst_49 = arith.constant dense<0.000000e+00> : vector<1x256xf32>
    %64 = tpu.matmul %62, %63, %cst_49 {dimension_numbers = #tpu.dot_dimension_numbers<[1], [0], [0], [1], [0, 0, 1, 1], [], []>} : vector<1x128xbf16>, vector<128x256xbf16>, vector<1x256xf32> -> vector<1x256xf32>
    %65 = vector.broadcast %64 : vector<1x256xf32> to vector<6x256xf32>
    %66 = arith.addf %60, %65 : vector<6x256xf32>
    %c0_50 = arith.constant 0 : index
    %c0_51 = arith.constant 0 : index
    %67 = vector.load %arg17[%c0_50, %c0_51] : memref<1x256xf32, #tpu.memory_space<vmem>>, vector<1x256xf32>
    %68 = vector.broadcast %67 : vector<1x256xf32> to vector<6x256xf32>
    %69 = arith.addf %66, %68 : vector<6x256xf32>
    %cst_52 = arith.constant 0.000000e+00 : f32
    %70 = vector.broadcast %cst_52 : f32 to vector<6x256xf32>
    %71 = arith.maximumf %69, %70 : vector<6x256xf32>
    %72 = arith.truncf %71 : vector<6x256xf32> to vector<6x256xbf16>
    %c0_53 = arith.constant 0 : index
    %c0_54 = arith.constant 0 : index
    %73 = vector.load %arg18[%c0_53, %c0_54] : memref<256x256xbf16, #tpu.memory_space<vmem>>, vector<256x256xbf16>
    %cst_55 = arith.constant dense<0.000000e+00> : vector<6x256xf32>
    %74 = tpu.matmul %72, %73, %cst_55 {dimension_numbers = #tpu.dot_dimension_numbers<[1], [0], [0], [1], [0, 0, 1, 1], [], []>} : vector<6x256xbf16>, vector<256x256xbf16>, vector<6x256xf32> -> vector<6x256xf32>
    %c0_56 = arith.constant 0 : index
    %c0_57 = arith.constant 0 : index
    %75 = vector.load %arg19[%c0_56, %c0_57] : memref<1x256xf32, #tpu.memory_space<vmem>>, vector<1x256xf32>
    %76 = vector.broadcast %75 : vector<1x256xf32> to vector<6x256xf32>
    %77 = arith.addf %74, %76 : vector<6x256xf32>
    %cst_58 = arith.constant 0.000000e+00 : f32
    %78 = vector.broadcast %cst_58 : f32 to vector<6x256xf32>
    %79 = arith.maximumf %77, %78 : vector<6x256xf32>
    %80 = arith.truncf %79 : vector<6x256xf32> to vector<6x256xbf16>
    %c0_59 = arith.constant 0 : index
    %c0_60 = arith.constant 0 : index
    %81 = vector.load %arg20[%c0_59, %c0_60] : memref<256x128xbf16, #tpu.memory_space<vmem>>, vector<256x128xbf16>
    %cst_61 = arith.constant dense<0.000000e+00> : vector<6x128xf32>
    %82 = tpu.matmul %80, %81, %cst_61 {dimension_numbers = #tpu.dot_dimension_numbers<[1], [0], [0], [1], [0, 0, 1, 1], [], []>} : vector<6x256xbf16>, vector<256x128xbf16>, vector<6x128xf32> -> vector<6x128xf32>
    %c0_62 = arith.constant 0 : index
    %c0_63 = arith.constant 0 : index
    %83 = vector.load %arg21[%c0_62, %c0_63] : memref<1x128xf32, #tpu.memory_space<vmem>>, vector<1x128xf32>
    %84 = vector.broadcast %83 : vector<1x128xf32> to vector<6x128xf32>
    %85 = arith.addf %82, %84 : vector<6x128xf32>
    %86 = arith.truncf %85 : vector<6x128xf32> to vector<6x128xbf16>
    %c0_64 = arith.constant 0 : index
    %c0_65 = arith.constant 0 : index
    %87 = vector.load %arg22[%c0_64, %c0_65] : memref<128x128xbf16, #tpu.memory_space<vmem>>, vector<128x128xbf16>
    %cst_66 = arith.constant dense<0.000000e+00> : vector<6x128xf32>
    %88 = tpu.matmul %86, %87, %cst_66 {dimension_numbers = #tpu.dot_dimension_numbers<[1], [0], [0], [1], [0, 0, 1, 1], [], []>} : vector<6x128xbf16>, vector<128x128xbf16>, vector<6x128xf32> -> vector<6x128xf32>
    %c0_67 = arith.constant 0 : index
    %c0_68 = arith.constant 0 : index
    %89 = vector.load %arg23[%c0_67, %c0_68] : memref<1x128xf32, #tpu.memory_space<vmem>>, vector<1x128xf32>
    %90 = vector.broadcast %89 : vector<1x128xf32> to vector<6x128xf32>
    %91 = arith.addf %88, %90 : vector<6x128xf32>
    %c0_69 = arith.constant 0 : index
    %c0_70 = arith.constant 0 : index
    %c0_71 = arith.constant 0 : index
    %92 = vector.load %arg27[%c0_69, %c0_70, %c0_71] : memref<1x6x128xf32, #tpu.memory_space<vmem>>, vector<1x6x128xf32>
    %93 = vector.shape_cast %92 : vector<1x6x128xf32> to vector<6x128xf32>
    %94 = vector.shape_cast %91 : vector<6x128xf32> to vector<1x6x128xf32>
    tpu.vector_store %arg27[%c0_69, %c0_70, %c0_71], %94 {strides = array<i32>} : memref<1x6x128xf32, #tpu.memory_space<vmem>>, vector<1x6x128xf32>,
    %95 = vector.extract_strided_slice %23 {offsets = [1, 0], sizes = [6, 128], strides = [1, 1]} : vector<8x128xf32> to vector<6x128xf32>
    %c0_72 = arith.constant 0 : index
    %c0_73 = arith.constant 0 : index
    %96 = vector.load %arg24[%c0_72, %c0_73] : memref<1x128xf32, #tpu.memory_space<vmem>>, vector<1x128xf32>
    %97 = vector.broadcast %96 : vector<1x128xf32> to vector<6x128xf32>
    %98 = arith.mulf %95, %97 : vector<6x128xf32>
    %99 = arith.addf %98, %85 : vector<6x128xf32>
    %c0_74 = arith.constant 0 : index
    %c0_75 = arith.constant 0 : index
    %c0_76 = arith.constant 0 : index
    %100 = vector.load %arg28[%c0_74, %c0_75, %c0_76] : memref<1x6x128xf32, #tpu.memory_space<vmem>>, vector<1x6x128xf32>
    %101 = vector.shape_cast %100 : vector<1x6x128xf32> to vector<6x128xf32>
    %102 = vector.shape_cast %99 : vector<6x128xf32> to vector<1x6x128xf32>
    tpu.vector_store %arg28[%c0_74, %c0_75, %c0_76], %102 {strides = array<i32>} : memref<1x6x128xf32, #tpu.memory_space<vmem>>, vector<1x6x128xf32>,
    return
  }
  func.func @transform_0(%arg0: i32) -> (i32, i32, i32) {
    %c0_i32 = arith.constant 0 : i32
    %c0_i32_0 = arith.constant 0 : i32
    %c0_i32_1 = arith.constant 0 : i32
    return %arg0, %c0_i32, %c0_i32_0 : i32, i32, i32
  }
  func.func @transform_1(%arg0: i32) -> (i32, i32) {
    %c0_i32 = arith.constant 0 : i32
    %c0_i32_0 = arith.constant 0 : i32
    %c0_i32_1 = arith.constant 0 : i32
    return %c0_i32, %c0_i32_0 : i32, i32
  }
  func.func @transform_2(%arg0: i32) -> (i32, i32) {
    %c0_i32 = arith.constant 0 : i32
    %c0_i32_0 = arith.constant 0 : i32
    %c0_i32_1 = arith.constant 0 : i32
    return %c0_i32, %c0_i32_0 : i32, i32
  }
  func.func @transform_3(%arg0: i32) -> (i32, i32) {
    %c0_i32 = arith.constant 0 : i32
    %c0_i32_0 = arith.constant 0 : i32
    %c0_i32_1 = arith.constant 0 : i32
    return %c0_i32, %c0_i32_0 : i32, i32
  }
  func.func @transform_4(%arg0: i32) -> (i32, i32) {
    %c0_i32 = arith.constant 0 : i32
    %c0_i32_0 = arith.constant 0 : i32
    %c0_i32_1 = arith.constant 0 : i32
    return %c0_i32, %c0_i32_0 : i32, i32
  }
  func.func @transform_5(%arg0: i32) -> (i32, i32) {
    %c0_i32 = arith.constant 0 : i32
    %c0_i32_0 = arith.constant 0 : i32
    %c0_i32_1 = arith.constant 0 : i32
    return %c0_i32, %c0_i32_0 : i32, i32
  }
  func.func @transform_6(%arg0: i32) -> (i32, i32) {
    %c0_i32 = arith.constant 0 : i32
    %c0_i32_0 = arith.constant 0 : i32
    %c0_i32_1 = arith.constant 0 : i32
    return %c0_i32, %c0_i32_0 : i32, i32
  }
  func.func @transform_7(%arg0: i32) -> (i32, i32) {
    %c0_i32 = arith.constant 0 : i32
    %c0_i32_0 = arith.constant 0 : i32
    %c0_i32_1 = arith.constant 0 : i32
    return %c0_i32, %c0_i32_0 : i32, i32
  }
  func.func @transform_8(%arg0: i32) -> (i32, i32) {
    %c0_i32 = arith.constant 0 : i32
    %c0_i32_0 = arith.constant 0 : i32
    %c0_i32_1 = arith.constant 0 : i32
    return %c0_i32, %c0_i32_0 : i32, i32
  }
  func.func @transform_9(%arg0: i32) -> (i32, i32) {
    %c0_i32 = arith.constant 0 : i32
    %c0_i32_0 = arith.constant 0 : i32
    %c0_i32_1 = arith.constant 0 : i32
    return %c0_i32, %c0_i32_0 : i32, i32
  }
  func.func @transform_10(%arg0: i32) -> (i32, i32) {
    %c0_i32 = arith.constant 0 : i32
    %c0_i32_0 = arith.constant 0 : i32
    %c0_i32_1 = arith.constant 0 : i32
    return %c0_i32, %c0_i32_0 : i32, i32
  }
  func.func @transform_11(%arg0: i32) -> (i32, i32) {
    %c0_i32 = arith.constant 0 : i32
    %c0_i32_0 = arith.constant 0 : i32
    %c0_i32_1 = arith.constant 0 : i32
    return %c0_i32, %c0_i32_0 : i32, i32
  }
  func.func @transform_12(%arg0: i32) -> (i32, i32) {
    %c0_i32 = arith.constant 0 : i32
    %c0_i32_0 = arith.constant 0 : i32
    %c0_i32_1 = arith.constant 0 : i32
    return %c0_i32, %c0_i32_0 : i32, i32
  }
  func.func @transform_13(%arg0: i32) -> (i32, i32) {
    %c0_i32 = arith.constant 0 : i32
    %c0_i32_0 = arith.constant 0 : i32
    %c0_i32_1 = arith.constant 0 : i32
    return %c0_i32, %c0_i32_0 : i32, i32
  }
  func.func @transform_14(%arg0: i32) -> (i32, i32) {
    %c0_i32 = arith.constant 0 : i32
    %c0_i32_0 = arith.constant 0 : i32
    %c0_i32_1 = arith.constant 0 : i32
    return %c0_i32, %c0_i32_0 : i32, i32
  }
  func.func @transform_15(%arg0: i32) -> (i32, i32) {
    %c0_i32 = arith.constant 0 : i32
    %c0_i32_0 = arith.constant 0 : i32
    %c0_i32_1 = arith.constant 0 : i32
    return %c0_i32, %c0_i32_0 : i32, i32
  }
  func.func @transform_16(%arg0: i32) -> (i32, i32) {
    %c0_i32 = arith.constant 0 : i32
    %c0_i32_0 = arith.constant 0 : i32
    %c0_i32_1 = arith.constant 0 : i32
    return %c0_i32, %c0_i32_0 : i32, i32
  }
  func.func @transform_17(%arg0: i32) -> (i32, i32) {
    %c0_i32 = arith.constant 0 : i32
    %c0_i32_0 = arith.constant 0 : i32
    %c0_i32_1 = arith.constant 0 : i32
    return %c0_i32, %c0_i32_0 : i32, i32
  }
  func.func @transform_18(%arg0: i32) -> (i32, i32) {
    %c0_i32 = arith.constant 0 : i32
    %c0_i32_0 = arith.constant 0 : i32
    %c0_i32_1 = arith.constant 0 : i32
    return %c0_i32, %c0_i32_0 : i32, i32
  }
  func.func @transform_19(%arg0: i32) -> (i32, i32) {
    %c0_i32 = arith.constant 0 : i32
    %c0_i32_0 = arith.constant 0 : i32
    %c0_i32_1 = arith.constant 0 : i32
    return %c0_i32, %c0_i32_0 : i32, i32
  }
  func.func @transform_20(%arg0: i32) -> (i32, i32) {
    %c0_i32 = arith.constant 0 : i32
    %c0_i32_0 = arith.constant 0 : i32
    %c0_i32_1 = arith.constant 0 : i32
    return %c0_i32, %c0_i32_0 : i32, i32
  }
  func.func @transform_21(%arg0: i32) -> (i32, i32) {
    %c0_i32 = arith.constant 0 : i32
    %c0_i32_0 = arith.constant 0 : i32
    %c0_i32_1 = arith.constant 0 : i32
    return %c0_i32, %c0_i32_0 : i32, i32
  }
  func.func @transform_22(%arg0: i32) -> (i32, i32) {
    %c0_i32 = arith.constant 0 : i32
    %c0_i32_0 = arith.constant 0 : i32
    %c0_i32_1 = arith.constant 0 : i32
    return %c0_i32, %c0_i32_0 : i32, i32
  }
  func.func @transform_23(%arg0: i32) -> (i32, i32) {
    %c0_i32 = arith.constant 0 : i32
    %c0_i32_0 = arith.constant 0 : i32
    %c0_i32_1 = arith.constant 0 : i32
    return %c0_i32, %c0_i32_0 : i32, i32
  }
  func.func @transform_24(%arg0: i32) -> (i32, i32, i32) {
    %c0_i32 = arith.constant 0 : i32
    %c0_i32_0 = arith.constant 0 : i32
    %c0_i32_1 = arith.constant 0 : i32
    return %arg0, %c0_i32, %c0_i32_0 : i32, i32, i32
  }
  func.func @transform_25(%arg0: i32) -> (i32, i32, i32) {
    %c0_i32 = arith.constant 0 : i32
    %c0_i32_0 = arith.constant 0 : i32
    %c0_i32_1 = arith.constant 0 : i32
    return %arg0, %c0_i32, %c0_i32_0 : i32, i32, i32
  }
  func.func @transform_26(%arg0: i32) -> (i32, i32, i32) {
    %c0_i32 = arith.constant 0 : i32
    %c0_i32_0 = arith.constant 0 : i32
    %c0_i32_1 = arith.constant 0 : i32
    return %arg0, %c0_i32, %c0_i32_0 : i32, i32, i32
  }
  func.func @transform_27(%arg0: i32) -> (i32, i32, i32) {
    %c0_i32 = arith.constant 0 : i32
    %c0_i32_0 = arith.constant 0 : i32
    %c0_i32_1 = arith.constant 0 : i32
    return %arg0, %c0_i32, %c0_i32_0 : i32, i32, i32
  }
}

</mosaic_0001>

<bundles_post_ra>
// kernel: koopman_forward.1
= control target key start
LH: loop header
LB: loop body
LE: loop exit
PB: predicated region body
PF: predicated region fallthrough
CT: control target
= control target key end

     0   :  { %s5464_s0 = inlined_call_operand.vmem [shape: f32[2,8,128], index: 0, kind: input, shape index: {}]   ;;  %s5465_s1 = inlined_call_operand.hbm [shape: bf16[128,128], index: 1, kind: input, shape index: {}]   ;;  %s5466_s2 = inlined_call_operand.hbm [shape: f32[1,128], index: 2, kind: input, shape index: {}]   ;;  %s5467_s3 = inlined_call_operand.vmem [shape: bf16[128,128], index: 3, kind: input, shape index: {}]   ;;  %s5468_s4 = inlined_call_operand.hbm [shape: f32[1,128], index: 4, kind: input, shape index: {}]   ;;  %s5469_s5 = inlined_call_operand.hbm [shape: bf16[128,128], index: 5, kind: input, shape index: {}]   ;;  %s5470_s6 = inlined_call_operand.hbm [shape: f32[1,128], index: 6, kind: input, shape index: {}]   ;;  %s5471_s7 = inlined_call_operand.hbm [shape: bf16[128,128], index: 7, kind: input, shape index: {}]   ;;  %s5472_s8 = inlined_call_operand.hbm [shape: f32[1,128], index: 8, kind: input, shape index: {}]   ;;  %s5473_s9 = inlined_call_operand.hbm [shape: bf16[128,128], index: 9, kind: input, shape index: {}]   ;;  %s5474_s10 = inlined_call_operand.hbm [shape: f32[1,128], index: 10, kind: input, shape index: {}]   ;;  %s5475_s11 = inlined_call_operand.hbm [shape: bf16[128,128], index: 11, kind: input, shape index: {}]   ;;  %s5476_s12 = inlined_call_operand.hbm [shape: f32[1,128], index: 12, kind: input, shape index: {}]   ;;  %s5477_s13 = inlined_call_operand.hbm [shape: bf16[128,256], index: 13, kind: input, shape index: {}]   ;;  %s5478_s14 = inlined_call_operand.hbm [shape: bf16[128,256], index: 14, kind: input, shape index: {}]   ;;  %s5479_s15 = inlined_call_operand.hbm [shape: bf16[128,256], index: 15, kind: input, shape index: {}]   ;;  %s5480_s16 = inlined_call_operand.vmem [shape: f32[1,256], index: 16, kind: input, shape index: {}]   ;;  %s5481_s17 = inlined_call_operand.hbm [shape: bf16[256,256], index: 17, kind: input, shape index: {}]   ;;  %s5482_s18 = inlined_call_operand.vmem [shape: f32[1,256], index: 18, kind: input, shape index: {}]   ;;  %s5483_s19 = inlined_call_operand.hbm [shape: bf16[256,128], index: 19, kind: input, shape index: {}]   ;;  %s5484_s20 = inlined_call_operand.vmem [shape: f32[1,128], index: 20, kind: input, shape index: {}]   ;;  %s5485_s21 = inlined_call_operand.hbm [shape: bf16[128,128], index: 21, kind: input, shape index: {}]   ;;  %s5486_s22 = inlined_call_operand.hbm [shape: f32[1,128], index: 22, kind: input, shape index: {}]   ;;  %s5487_s23 = inlined_call_operand.vmem [shape: f32[1,128], index: 23, kind: input, shape index: {}]   ;;  %s5488_s24 = inlined_call_operand.vmem [shape: f32[2,8,128], index: 24, kind: output, shape index: {0}]   ;;  %s5489_s25 = inlined_call_operand.hbm [shape: f32[2,8,128], index: 25, kind: output, shape index: {1}]   ;;  %s5490_s26 = inlined_call_operand.vmem [shape: f32[2,6,128], index: 26, kind: output, shape index: {2}]   ;;  %s5491_s27 = inlined_call_operand.vmem [shape: f32[2,6,128], index: 27, kind: output, shape index: {3}]  }
   0x1   :  { %5529 = sst [smem:[#allocation50_spill]] %s5464_s0 }
   0x2   :  { %5530 = sst [smem:[#allocation51_spill]] %s5465_s1 }
   0x3   :  { %5531 = sst [smem:[#allocation52_spill]] %s5466_s2 }
   0x4   :  { %5532 = sst [smem:[#allocation53_spill]] %s5467_s3 }
   0x5   :  { %5533 = sst [smem:[#allocation54_spill]] %s5468_s4 }
   0x6   :  { %5534 = sst [smem:[#allocation55_spill]] %s5469_s5 }
   0x7   :  { %5535 = sst [smem:[#allocation56_spill]] %s5470_s6 }
   0x8   :  { %5536 = sst [smem:[#allocation57_spill]] %s5471_s7 }
   0x9   :  { %5537 = sst [smem:[#allocation58_spill]] %s5472_s8 }
   0xa   :  { %5538 = sst [smem:[#allocation59_spill]] %s5473_s9 }
   0xb   :  { %5539 = sst [smem:[#allocation60_spill]] %s5474_s10 }
   0xc   :  { %5540 = sst [smem:[#allocation61_spill]] %s5475_s11 }
   0xd   :  { %5541 = sst [smem:[#allocation62_spill]] %s5476_s12 }
   0xe   :  { %5542 = sst [smem:[#allocation63_spill]] %s5477_s13 }
   0xf   :  { %5543 = sst [smem:[#allocation64_spill]] %s5479_s15 }
  0x10   :  { %5544 = sst [smem:[#allocation65_spill]] %s5480_s16 }
  0x11   :  { %5545 = sst [smem:[#allocation66_spill]] %s5482_s18 }
  0x12   :  { %5546 = sst [smem:[#allocation67_spill]] %s5484_s20 }
  0x13   :  { %5547 = sst [smem:[#allocation68_spill]] %s5487_s23 }
  0x14   :  { %5548 = sst [smem:[#allocation69_spill]] %s5489_s25 }
  0x15   :  { %5549 = sst [smem:[#allocation70_spill]] %s5490_s26 }
  0x16   :  { %5550 = sst [smem:[#allocation71_spill]] %s5491_s27 }
  0x17   :  { %33 = vsyncpa [#allocation3], 0 }
  0x18   :  { %34 = vsyncpa [#allocation6], 0 }
  0x19   :  { %35 = vsyncpa [#allocation9], 0 }
  0x1a   :  { %36 = vsyncpa [#allocation12], 0 }
  0x1b   :  { %37 = vsyncpa [#allocation15], 0 }
  0x1c   :  { %38 = vsyncpa [#allocation18], 0 }
  0x1d   :  { %39 = vsyncpa [#allocation21], 0 }
  0x1e   :  { %40 = vsyncpa [#allocation24], 0 }
  0x1f   :  { %41 = vsyncpa [#allocation27], 0 }
  0x20   :  { %42 = vsyncpa [#allocation30], 0 }
  0x21   :  { %43 = vsyncpa [#allocation4], 0 }
  0x22   :  { %45 = vsyncpa [#allocation4 + $0x1], 0  ;;  %s4740_s7 = smov 0   ;;  %s4742_s4 = smov 0  }
  0x23   :  { %s4744_s8 = smov 0   ;;  %s4746_s30 = smov 0  }
  0x24 LB: > { %5551 = sst [smem:[#allocation43_spill]] %s4560_s7  ;;  %s4761_s9 = sadd.s32 4294967295, %s4572_s30   ;;  %s4572_s30 = sphi %s4746_s30, %s5619_s30   ;;  %s4568_s8 = sphi %s4744_s8, %s5621_s8   ;;  %s4564_s4 = sphi %s4742_s4, %s5623_s4   ;;  %s4560_s7 = sphi %s4740_s7, %s5622_s7  }
  0x25   : > { %5552 = sst [smem:[#allocation44_spill]] %s4568_s8  ;;  %s3112_s5 = sadd.s32 4294967294, %s4572_s30  }
  0x26   : > { %5553 = sst [smem:[#allocation45_spill]] %s4572_s30  ;;  %s4765_s28 = sadd.s32 1, %s4572_s30  }
  0x27   : > { %5554 = sst [smem:[#allocation46_spill]] %s4765_s28  ;;  %s593_s0 = sadd.s32 1, %s4568_s8 }
  0x28   : > { %s590_s10 = ssub.s32 %s4572_s30, %s4765_s28  ;;  %p603_p0 = scmp.ne.s32.totalorder %s4568_s8, %s4564_s4 }
  0x29   : > { %p591_p1 = scmp.eq.s32.totalorder %s590_s10, 0  ;;  %p604_p2 = scmp.eq.s32.totalorder %s4761_s9, 1 }
  0x2a   : > { %p609_p3 = scmp.ne.s32.totalorder %s4564_s4, %s4560_s7  ;;  %p610_p4 = scmp.eq.s32.totalorder %s3112_s5, 1 }
  0x2b   : > { %s4776_s29 = scalar_select %p591_p1, %s4568_s8, %s593_s0  }
  0x2c   : > { %p4778_p5 = por %p604_p2, %p603_p0  ;;  %p4782_p6 = por %p610_p4, %p609_p3 }
  0x2d   : > { %5555 = sst [smem:[#allocation47_spill]] %s4776_s29  ;;  %p3113_p7 = scmp.ge.s32.totalorder %s4572_s30, 1 }
  0x2e   : > { %s5556_s1 = scalar_select %p4778_p5, 1, 0 }
  0x2f   : > { %s5558_s6 = scalar_select %p4782_p6, 1, 0 }
  0x30   : > { %5557 = sst [smem:[#allocation48_spill]] %s5556_s1  ;;  %p669_p8 = scmp.lt.s32.totalorder %s4572_s30, 3 }
  0x31   : > { %5559 = sst [smem:[#allocation49_spill]] %s5558_s6  ;;  %p5510_p9 = scmp.eq.s32.totalorder %s4761_s9, 0 }
  0x32   : > { %p4789_p10 = pnand %p3113_p7, %p669_p8  ;;  %s4574_s2 = smov [#allocation5]  }
  0x33   : > { %s695_s3 = sshll.u32 %s4574_s2, 4  ;;  %s4575_s0 = smov [#allocation8]   ;;  %s696_s3 = int_to_ptr.vmem [resolvable:$true] %s695_s3 }
  0x34   : > { %s5560_s11 = scalar_select %p4789_p10, 1, 0 }
  0x35   : > { %p3621_p11 = pneg %p4789_p10  ;;  %s719_s10 = sshll.u32 %s4575_s0, 4  ;;  %s4801_s10 = int_to_ptr.vmem [resolvable:$true] %s719_s10 }
  0x36   : > { %s4576_s29 = smov [#allocation11]   ;;  %s5562_s7 = sld [smem:[#allocation52_spill]] }
  0x37   : > { %p4797_p12 = pnand %p5510_p9, %p3621_p11  ;;  %s4803_s8 = sshll.u32 %s4576_s29, 4  ;;  %s744_s8 = int_to_ptr.vmem [resolvable:$true] %s4803_s8 }
  0x39   : > { %p4813_p0 = pneg %p4797_p12 }
  0x3c   : > { %s5563_s26 = smov %s5562_s7  ;;  %s3966_s2 = scalar_lea.hbm %s5562_s7, 16 }
  0x3d   : > { %p3967_p13 = scmp.ne.s32.totalorder %s5563_s26, %s3966_s2  ;;  %p3973_p3 = scmp.lt.u32.totalorder %s3966_s2, %s5563_s26 }
  0x3f   : > { %p3969_p1 = pnand %p4813_p0, %p3967_p13 }
  0x41   : > { %p3970_p2 = pneg %p3969_p1 }
  0x43   : > { %p3975_p4 = pnand %p3973_p3, %p3970_p2 }
  0x45   : > { %3978 = shalt.err (!%p3975_p4)
}
  0x46   : > { %s3979_s7 = scalar_lea.vmem %s696_s3, 16  ;;  %s3986_s25 = scalar_lea.vmem %s696_s3, 32 }
  0x47   : > { %p3980_p7 = scmp.ne.s32.totalorder %s696_s3, %s3979_s7  ;;  %p3987_p9 = scmp.lt.s32.totalorder %s696_s3, %s696_s3 }
  0x48   : > { %p3988_p6 = scmp.lt.s32.totalorder %s3986_s25, %s3979_s7 }
  0x49   : > { %p3982_p8 = pnand %p3980_p7, %p4813_p0 }
  0x4a   : > { %p3989_p5 = por %p3988_p6, %p3987_p9 }
  0x4b   : > { %p3983_p11 = pneg %p3982_p8 }
  0x4d   : > { %p3990_p10 = pnand %p3989_p5, %p3983_p11 }
  0x4f   : > { %3993 = shalt.err (!%p3990_p10)
}
  0x50   : > { %3627 = dma.hbm_to_vmem [thread:$0]  (!%p4797_p12), %s5563_s26, 16, %s696_s3, [#allocation6]  }
  0x51   : > { %s5565_s0 = sld [smem:[#allocation55_spill]] }
  0x57   : > { %s3994_s29 = scalar_lea.hbm %s5565_s0, 1024 }
  0x58   : > { %p3995_p13 = scmp.ne.s32.totalorder %s5565_s0, %s3994_s29  ;;  %p4001_p5 = scmp.lt.u32.totalorder %s3994_s29, %s5565_s0 }
  0x5a   : > { %p3997_p1 = pnand %p3995_p13, %p4813_p0 }
  0x5c   : > { %p3998_p6 = pneg %p3997_p1 }
  0x5e   : > { %p4003_p9 = pnand %p4001_p5, %p3998_p6 }
  0x60   : > { %4006 = shalt.err (!%p4003_p9)
}
  0x61   : > { %s4007_s3 = scalar_lea.vmem %s4801_s10, 1024  ;;  %p4015_p4 = scmp.lt.s32.totalorder %s4801_s10, %s4801_s10 }
  0x62   : > { %p4008_p10 = scmp.ne.s32.totalorder %s4801_s10, %s4007_s3  ;;  %p4016_p7 = scmp.lt.s32.totalorder %s4007_s3, %s4007_s3 }
  0x64   : > { %p4010_p2 = pnand %p4008_p10, %p4813_p0  ;;  %p4017_p8 = por %p4016_p7, %p4015_p4 }
  0x66   : > { %p4011_p3 = pneg %p4010_p2 }
  0x68   : > { %p4018_p11 = pnand %p4017_p8, %p4011_p3 }
  0x6a   : > { %4021 = shalt.err (!%p4018_p11)
}
  0x6b   : > { %s5517_s23 = smov 64   ;;  %s5519_s1 = smov 4  }
  0x6c   : > { %3633 = dma.hbm_to_vmem [thread:$0]  (!%p4797_p12), %s5565_s0, 1024, %s4801_s10, [#allocation9], %s5517_s23, %s5517_s23, %s5519_s1  }
  0x6d   : > { %s5566_s29 = sld [smem:[#allocation57_spill]] }
  0x73   : > { %s4022_s7 = scalar_lea.hbm %s5566_s29, 1024 }
  0x74   : > { %p4023_p13 = scmp.ne.s32.totalorder %s5566_s29, %s4022_s7  ;;  %p4029_p5 = scmp.lt.u32.totalorder %s4022_s7, %s5566_s29 }
  0x76   : > { %p4025_p1 = pnand %p4023_p13, %p4813_p0 }
  0x78   : > { %p4026_p6 = pneg %p4025_p1 }
  0x7a   : > { %p4031_p9 = pnand %p4029_p5, %p4026_p6 }
  0x7c   : > { %4034 = shalt.err (!%p4031_p9)
}
  0x7d   : > { %s4035_s30 = scalar_lea.vmem %s744_s8, 1024  ;;  %p4043_p4 = scmp.lt.s32.totalorder %s744_s8, %s744_s8 }
  0x7e   : > { %p4036_p10 = scmp.ne.s32.totalorder %s744_s8, %s4035_s30  ;;  %p4044_p7 = scmp.lt.s32.totalorder %s4035_s30, %s4035_s30 }
  0x80   : > { %p4038_p2 = pnand %p4036_p10, %p4813_p0  ;;  %p4045_p8 = por %p4044_p7, %p4043_p4 }
  0x82   : > { %p4039_p3 = pneg %p4038_p2 }
  0x84   : > { %p4046_p11 = pnand %p4045_p8, %p4039_p3 }
  0x86   : > { %4049 = shalt.err (!%p4046_p11)
}
  0x87   : > { %3639 = dma.hbm_to_vmem [thread:$0]  (!%p4797_p12), %s5566_s29, 1024, %s744_s8, [#allocation12], %s5517_s23, %s5517_s23, %s5519_s1  }
  0x88   : > { %s4579_s10 = smov [#allocation14]   ;;  %s4580_s6 = smov [#allocation17]  }
  0x89   : > { %s767_s28 = sshll.u32 %s4579_s10, 4  ;;  %s791_s2 = sshll.u32 %s4580_s6, 4  ;;  %s768_s28 = int_to_ptr.vmem [resolvable:$true] %s767_s28  ;;  %s792_s2 = int_to_ptr.vmem [resolvable:$true] %s791_s2 }
  0x8a   : > { %s5567_s3 = sld [smem:[#allocation59_spill]] }
  0x90   : > { %s4050_s30 = scalar_lea.hbm %s5567_s3, 1024 }
  0x91   : > { %p4051_p13 = scmp.ne.s32.totalorder %s5567_s3, %s4050_s30  ;;  %p4057_p5 = scmp.lt.u32.totalorder %s4050_s30, %s5567_s3 }
  0x93   : > { %p4053_p1 = pnand %p4051_p13, %p4813_p0 }
  0x95   : > { %p4054_p6 = pneg %p4053_p1 }
  0x97   : > { %p4059_p9 = pnand %p4057_p5, %p4054_p6 }
  0x99   : > { %4062 = shalt.err (!%p4059_p9)
}
  0x9a   : > { %s4063_s8 = scalar_lea.vmem %s768_s28, 1024  ;;  %p4071_p4 = scmp.lt.s32.totalorder %s768_s28, %s768_s28 }
  0x9b   : > { %p4064_p10 = scmp.ne.s32.totalorder %s768_s28, %s4063_s8  ;;  %p4072_p7 = scmp.lt.s32.totalorder %s4063_s8, %s4063_s8 }
  0x9d   : > { %p4066_p2 = pnand %p4064_p10, %p4813_p0  ;;  %p4073_p8 = por %p4072_p7, %p4071_p4 }
  0x9f   : > { %p4067_p3 = pneg %p4066_p2 }
  0xa1   : > { %p4074_p11 = pnand %p4073_p8, %p4067_p3 }
  0xa3   : > { %4077 = shalt.err (!%p4074_p11)
}
  0xa4   : > { %3645 = dma.hbm_to_vmem [thread:$0]  (!%p4797_p12), %s5567_s3, 1024, %s768_s28, [#allocation15], %s5517_s23, %s5517_s23, %s5519_s1  }
  0xa5   : > { %s5568_s10 = sld [smem:[#allocation61_spill]] }
  0xab   : > { %s4078_s6 = scalar_lea.hbm %s5568_s10, 1024 }
  0xac   : > { %p4079_p13 = scmp.ne.s32.totalorder %s5568_s10, %s4078_s6  ;;  %p4085_p5 = scmp.lt.u32.totalorder %s4078_s6, %s5568_s10 }
  0xae   : > { %p4081_p1 = pnand %p4079_p13, %p4813_p0 }
  0xb0   : > { %p4082_p6 = pneg %p4081_p1 }
  0xb2   : > { %p4087_p9 = pnand %p4085_p5, %p4082_p6 }
  0xb4   : > { %4090 = shalt.err (!%p4087_p9)
}
  0xb5   : > { %s4091_s8 = scalar_lea.vmem %s792_s2, 1024  ;;  %p4099_p4 = scmp.lt.s32.totalorder %s792_s2, %s792_s2 }
  0xb6   : > { %p4092_p10 = scmp.ne.s32.totalorder %s792_s2, %s4091_s8  ;;  %p4100_p7 = scmp.lt.s32.totalorder %s4091_s8, %s4091_s8 }
  0xb8   : > { %p4094_p2 = pnand %p4092_p10, %p4813_p0  ;;  %p4101_p8 = por %p4100_p7, %p4099_p4 }
  0xba   : > { %p4095_p3 = pneg %p4094_p2 }
  0xbc   : > { %p4102_p11 = pnand %p4101_p8, %p4095_p3 }
  0xbe   : > { %4105 = shalt.err (!%p4102_p11)
}
  0xbf   : > { %3651 = dma.hbm_to_vmem [thread:$0]  (!%p4797_p12), %s5568_s10, 1024, %s792_s2, [#allocation18], %s5517_s23, %s5517_s23, %s5519_s1  }
  0xc0   : > { %s4581_s18 = smov [#allocation20]   ;;  %s5569_s13 = sld [smem:[#allocation63_spill]] }
  0xc1   : > { %s815_s0 = sshll.u32 %s4581_s18, 4  ;;  %s816_s0 = int_to_ptr.vmem [resolvable:$true] %s815_s0 }
  0xc6   : > { %s4106_s7 = scalar_lea.hbm %s5569_s13, 2048 }
  0xc7   : > { %p4107_p13 = scmp.ne.s32.totalorder %s5569_s13, %s4106_s7  ;;  %p4113_p5 = scmp.lt.u32.totalorder %s4106_s7, %s5569_s13 }
  0xc9   : > { %p4109_p1 = pnand %p4107_p13, %p4813_p0 }
  0xcb   : > { %p4110_p6 = pneg %p4109_p1 }
  0xcd   : > { %p4115_p9 = pnand %p4113_p5, %p4110_p6 }
  0xcf   : > { %4118 = shalt.err (!%p4115_p9)
}
  0xd0   : > { %s4119_s2 = scalar_lea.vmem %s816_s0, 2048  ;;  %p4127_p4 = scmp.lt.s32.totalorder %s816_s0, %s816_s0 }
  0xd1   : > { %p4120_p10 = scmp.ne.s32.totalorder %s816_s0, %s4119_s2  ;;  %p4128_p7 = scmp.lt.s32.totalorder %s4119_s2, %s4119_s2 }
  0xd3   : > { %p4122_p2 = pnand %p4120_p10, %p4813_p0  ;;  %p4129_p8 = por %p4128_p7, %p4127_p4 }
  0xd5   : > { %p4123_p3 = pneg %p4122_p2 }
  0xd7   : > { %p4130_p11 = pnand %p4129_p8, %p4123_p3 }
  0xd9   : > { %4133 = shalt.err (!%p4130_p11)
}
  0xda   : > { %s5521_s28 = smov 128   ;;  %s5523_s16 = smov 8  }
  0xdb   : > { %3657 = dma.hbm_to_vmem [thread:$0]  (!%p4797_p12), %s5569_s13, 2048, %s816_s0, [#allocation21], %s5521_s28, %s5521_s28, %s5523_s16  }
  0xdc   : > { %s4584_s6 = smov [#allocation23]   ;;  %s4585_s25 = smov [#allocation26]  }
  0xdd   : > { %s841_s7 = sshll.u32 %s4584_s6, 4  ;;  %s873_s30 = sshll.u32 %s4585_s25, 4  ;;  %s842_s7 = int_to_ptr.vmem [resolvable:$true] %s841_s7  ;;  %s4940_s30 = int_to_ptr.vmem [resolvable:$true] %s873_s30 }
  0xde   : > { %s5570_s15 = sld [smem:[#allocation64_spill]] }
  0xe4   : > { %s4134_s2 = scalar_lea.hbm %s5570_s15, 2048 }
  0xe5   : > { %p4135_p13 = scmp.ne.s32.totalorder %s5570_s15, %s4134_s2  ;;  %p4141_p5 = scmp.lt.u32.totalorder %s4134_s2, %s5570_s15 }
  0xe7   : > { %p4137_p1 = pnand %p4135_p13, %p4813_p0 }
  0xe9   : > { %p4138_p6 = pneg %p4137_p1 }
  0xeb   : > { %p4143_p9 = pnand %p4141_p5, %p4138_p6 }
  0xed   : > { %4146 = shalt.err (!%p4143_p9)
}
  0xee   : > { %s4147_s26 = scalar_lea.vmem %s842_s7, 2048  ;;  %p4155_p4 = scmp.lt.s32.totalorder %s842_s7, %s842_s7 }
  0xef   : > { %p4148_p10 = scmp.ne.s32.totalorder %s842_s7, %s4147_s26  ;;  %p4156_p7 = scmp.lt.s32.totalorder %s4147_s26, %s4147_s26 }
  0xf1   : > { %p4150_p2 = pnand %p4148_p10, %p4813_p0  ;;  %p4157_p8 = por %p4156_p7, %p4155_p4 }
  0xf3   : > { %p4151_p3 = pneg %p4150_p2 }
  0xf5   : > { %p4158_p11 = pnand %p4157_p8, %p4151_p3 }
  0xf7   : > { %4161 = shalt.err (!%p4158_p11)
}
  0xf8   : > { %3663 = dma.hbm_to_vmem [thread:$0]  (!%p4797_p12), %s5570_s15, 2048, %s842_s7, [#allocation24], %s5521_s28, %s5521_s28, %s5523_s16  }
  0xf9   : > { %s4162_s20 = scalar_lea.hbm %s5483_s19, 2048 }
  0xfa   : > { %p4163_p13 = scmp.ne.s32.totalorder %s5483_s19, %s4162_s20  ;;  %p4169_p5 = scmp.lt.u32.totalorder %s4162_s20, %s5483_s19 }
  0xfc   : > { %p4165_p1 = pnand %p4163_p13, %p4813_p0 }
  0xfe   : > { %p4166_p6 = pneg %p4165_p1 }
 0x100   : > { %p4171_p9 = pnand %p4169_p5, %p4166_p6 }
 0x102   : > { %4174 = shalt.err (!%p4171_p9)
}
 0x103   : > { %s4175_s7 = scalar_lea.vmem %s4940_s30, 2048  ;;  %p4183_p4 = scmp.lt.s32.totalorder %s4940_s30, %s4940_s30 }
 0x104   : > { %p4176_p10 = scmp.ne.s32.totalorder %s4940_s30, %s4175_s7  ;;  %p4184_p7 = scmp.lt.s32.totalorder %s4175_s7, %s4175_s7 }
 0x106   : > { %p4178_p2 = pnand %p4176_p10, %p4813_p0  ;;  %p4185_p8 = por %p4184_p7, %p4183_p4 }
 0x108   : > { %p4179_p3 = pneg %p4178_p2 }
 0x10a   : > { %p4186_p11 = pnand %p4185_p8, %p4179_p3 }
 0x10c   : > { %4189 = shalt.err (!%p4186_p11)
}
 0x10d   : > { %s5571_s26 = smov 4   ;;  %s5572_s23 = smov 64  }
 0x10e   : > { %3669 = dma.hbm_to_vmem [thread:$0]  (!%p4797_p12), %s5483_s19, 2048, %s4940_s30, [#allocation27], %s5572_s23, %s5572_s23, %s5571_s26  }
 0x10f   : > { %s4586_s25 = smov [#allocation2]   ;;  %s4587_s8 = smov [#allocation7]  }
 0x110   : > { %s681_s20 = sshll.u32 %s4586_s25, 4  ;;  %s709_s2 = sshll.u32 %s4587_s8, 4  ;;  %s682_s20 = int_to_ptr.vmem [resolvable:$true] %s681_s20  ;;  %s4989_s2 = int_to_ptr.vmem [resolvable:$true] %s709_s2 }
 0x111   : > { %s5573_s7 = sld [smem:[#allocation51_spill]] }
 0x117   : > { %s5574_s28 = smov %s5573_s7  ;;  %s4190_s16 = scalar_lea.hbm %s5573_s7, 1024 }
 0x118   : > { %p4191_p13 = scmp.ne.s32.totalorder %s5574_s28, %s4190_s16  ;;  %p4197_p5 = scmp.lt.u32.totalorder %s4190_s16, %s5574_s28 }
 0x11a   : > { %p4193_p1 = pnand %p4191_p13, %p4813_p0 }
 0x11c   : > { %p4194_p6 = pneg %p4193_p1 }
 0x11e   : > { %p4199_p9 = pnand %p4197_p5, %p4194_p6 }
 0x120   : > { %4202 = shalt.err (!%p4199_p9)
}
 0x121   : > { %s4203_s6 = scalar_lea.vmem %s682_s20, 1024  ;;  %p4211_p4 = scmp.lt.s32.totalorder %s682_s20, %s682_s20 }
 0x122   : > { %p4204_p10 = scmp.ne.s32.totalorder %s682_s20, %s4203_s6  ;;  %p4212_p7 = scmp.lt.s32.totalorder %s4203_s6, %s4203_s6 }
 0x124   : > { %p4206_p2 = pnand %p4204_p10, %p4813_p0  ;;  %p4213_p8 = por %p4212_p7, %p4211_p4 }
 0x126   : > { %p4207_p3 = pneg %p4206_p2 }
 0x128   : > { %p4214_p11 = pnand %p4213_p8, %p4207_p3 }
 0x12a   : > { %4217 = shalt.err (!%p4214_p11)
}
 0x12b   : > { %3624 = dma.hbm_to_vmem [thread:$0]  (!%p4797_p12), %s5574_s28, 1024, %s682_s20, [#allocation3], %s5572_s23, %s5572_s23, %s5571_s26  }
 0x12c   : > { %s5575_s8 = sld [smem:[#allocation54_spill]] }
 0x132   : > { %s5576_s18 = smov %s5575_s8  ;;  %s4218_s0 = scalar_lea.hbm %s5575_s8, 16 }
 0x133   : > { %p4219_p13 = scmp.ne.s32.totalorder %s5576_s18, %s4218_s0  ;;  %p4225_p5 = scmp.lt.u32.totalorder %s4218_s0, %s5576_s18 }
 0x135   : > { %p4221_p1 = pnand %p4219_p13, %p4813_p0 }
 0x137   : > { %p4222_p6 = pneg %p4221_p1 }
 0x139   : > { %p4227_p9 = pnand %p4225_p5, %p4222_p6 }
 0x13b   : > { %4230 = shalt.err (!%p4227_p9)
}
 0x13c   : > { %s4231_s20 = scalar_lea.vmem %s4989_s2, 16  ;;  %s4238_s3 = scalar_lea.vmem %s4989_s2, 32 }
 0x13d   : > { %p4232_p10 = scmp.ne.s32.totalorder %s4989_s2, %s4231_s20  ;;  %p4239_p4 = scmp.lt.s32.totalorder %s4989_s2, %s4989_s2 }
 0x13e   : > { %p4240_p7 = scmp.lt.s32.totalorder %s4238_s3, %s4231_s20 }
 0x13f   : > { %p4234_p2 = pnand %p4232_p10, %p4813_p0 }
 0x140   : > { %p4241_p8 = por %p4240_p7, %p4239_p4 }
 0x141   : > { %p4235_p3 = pneg %p4234_p2 }
 0x143   : > { %p4242_p11 = pnand %p4241_p8, %p4235_p3 }
 0x145   : > { %4245 = shalt.err (!%p4242_p11)
}
 0x146   : > { %3630 = dma.hbm_to_vmem [thread:$0]  (!%p4797_p12), %s5576_s18, 16, %s4989_s2, [#allocation6]  }
 0x147   : > { %s4588_s25 = smov [#allocation10]   ;;  %s4589_s0 = smov [#allocation13]  }
 0x148   : > { %s733_s8 = sshll.u32 %s4588_s25, 4  ;;  %s757_s7 = sshll.u32 %s4589_s0, 4  ;;  %s734_s8 = int_to_ptr.vmem [resolvable:$true] %s733_s8  ;;  %s5036_s7 = int_to_ptr.vmem [resolvable:$true] %s757_s7 }
 0x149   : > { %s5577_s6 = sld [smem:[#allocation56_spill]] }
 0x14f   : > { %s4246_s20 = scalar_lea.hbm %s5577_s6, 16 }
 0x150   : > { %p4247_p13 = scmp.ne.s32.totalorder %s5577_s6, %s4246_s20  ;;  %p4253_p5 = scmp.lt.u32.totalorder %s4246_s20, %s5577_s6 }
 0x152   : > { %p4249_p1 = pnand %p4247_p13, %p4813_p0 }
 0x154   : > { %p4250_p6 = pneg %p4249_p1 }
 0x156   : > { %p4255_p9 = pnand %p4253_p5, %p4250_p6 }
 0x158   : > { %4258 = shalt.err (!%p4255_p9)
}
 0x159   : > { %s4259_s16 = scalar_lea.vmem %s734_s8, 16  ;;  %s4266_s25 = scalar_lea.vmem %s734_s8, 32 }
 0x15a   : > { %p4260_p10 = scmp.ne.s32.totalorder %s734_s8, %s4259_s16  ;;  %p4267_p4 = scmp.lt.s32.totalorder %s734_s8, %s734_s8 }
 0x15b   : > { %p4268_p7 = scmp.lt.s32.totalorder %s4266_s25, %s4259_s16 }
 0x15c   : > { %p4262_p2 = pnand %p4260_p10, %p4813_p0 }
 0x15d   : > { %p4269_p8 = por %p4268_p7, %p4267_p4 }
 0x15e   : > { %p4263_p3 = pneg %p4262_p2 }
 0x160   : > { %p4270_p11 = pnand %p4269_p8, %p4263_p3 }
 0x162   : > { %4273 = shalt.err (!%p4270_p11)
}
 0x163   : > { %3636 = dma.hbm_to_vmem [thread:$0]  (!%p4797_p12), %s5577_s6, 16, %s734_s8, [#allocation9]  }
 0x164   : > { %s5578_s20 = sld [smem:[#allocation58_spill]] }
 0x16a   : > { %s4274_s3 = scalar_lea.hbm %s5578_s20, 16 }
 0x16b   : > { %p4275_p13 = scmp.ne.s32.totalorder %s5578_s20, %s4274_s3  ;;  %p4281_p5 = scmp.lt.u32.totalorder %s4274_s3, %s5578_s20 }
 0x16d   : > { %p4277_p1 = pnand %p4275_p13, %p4813_p0 }
 0x16f   : > { %p4278_p6 = pneg %p4277_p1 }
 0x171   : > { %p4283_p9 = pnand %p4281_p5, %p4278_p6 }
 0x173   : > { %4286 = shalt.err (!%p4283_p9)
}
 0x174   : > { %s4287_s8 = scalar_lea.vmem %s5036_s7, 16  ;;  %s4294_s13 = scalar_lea.vmem %s5036_s7, 32 }
 0x175   : > { %p4288_p10 = scmp.ne.s32.totalorder %s5036_s7, %s4287_s8  ;;  %p4295_p4 = scmp.lt.s32.totalorder %s5036_s7, %s5036_s7 }
 0x176   : > { %p4296_p7 = scmp.lt.s32.totalorder %s4294_s13, %s4287_s8 }
 0x177   : > { %p4290_p2 = pnand %p4288_p10, %p4813_p0 }
 0x178   : > { %p4297_p8 = por %p4296_p7, %p4295_p4 }
 0x179   : > { %p4291_p3 = pneg %p4290_p2 }
 0x17b   : > { %p4298_p11 = pnand %p4297_p8, %p4291_p3 }
 0x17d   : > { %4301 = shalt.err (!%p4298_p11)
}
 0x17e   : > { %3642 = dma.hbm_to_vmem [thread:$0]  (!%p4797_p12), %s5578_s20, 16, %s5036_s7, [#allocation12]  }
 0x17f   : > { %s4590_s30 = smov [#allocation16]   ;;  %s4591_s10 = smov [#allocation19]  }
 0x180   : > { %s781_s3 = sshll.u32 %s4590_s30, 4  ;;  %s805_s2 = sshll.u32 %s4591_s10, 4  ;;  %s782_s3 = int_to_ptr.vmem [resolvable:$true] %s781_s3  ;;  %s5080_s2 = int_to_ptr.vmem [resolvable:$true] %s805_s2 }
 0x181   : > { %s5579_s8 = sld [smem:[#allocation60_spill]] }
 0x187   : > { %s5580_s13 = smov %s5579_s8  ;;  %s4302_s6 = scalar_lea.hbm %s5579_s8, 16 }
 0x188   : > { %p4303_p13 = scmp.ne.s32.totalorder %s5580_s13, %s4302_s6  ;;  %p4309_p5 = scmp.lt.u32.totalorder %s4302_s6, %s5580_s13 }
 0x18a   : > { %p4305_p1 = pnand %p4303_p13, %p4813_p0 }
 0x18c   : > { %p4306_p6 = pneg %p4305_p1 }
 0x18e   : > { %p4311_p9 = pnand %p4309_p5, %p4306_p6 }
 0x190   : > { %4314 = shalt.err (!%p4311_p9)
}
 0x191   : > { %s4315_s1 = scalar_lea.vmem %s782_s3, 16  ;;  %s4322_s30 = scalar_lea.vmem %s782_s3, 32 }
 0x192   : > { %p4316_p10 = scmp.ne.s32.totalorder %s782_s3, %s4315_s1  ;;  %p4323_p4 = scmp.lt.s32.totalorder %s782_s3, %s782_s3 }
 0x193   : > { %p4324_p7 = scmp.lt.s32.totalorder %s4322_s30, %s4315_s1 }
 0x194   : > { %p4318_p2 = pnand %p4316_p10, %p4813_p0 }
 0x195   : > { %p4325_p8 = por %p4324_p7, %p4323_p4 }
 0x196   : > { %p4319_p3 = pneg %p4318_p2 }
 0x198   : > { %p4326_p11 = pnand %p4325_p8, %p4319_p3 }
 0x19a   : > { %4329 = shalt.err (!%p4326_p11)
}
 0x19b   : > { %3648 = dma.hbm_to_vmem [thread:$0]  (!%p4797_p12), %s5580_s13, 16, %s782_s3, [#allocation15]  }
 0x19c   : > { %s5581_s12 = sld [smem:[#allocation62_spill]] }
 0x1a2   : > { %s4330_s16 = scalar_lea.hbm %s5581_s12, 16 }
 0x1a3   : > { %p4331_p13 = scmp.ne.s32.totalorder %s5581_s12, %s4330_s16  ;;  %p4337_p5 = scmp.lt.u32.totalorder %s4330_s16, %s5581_s12 }
 0x1a5   : > { %p4333_p1 = pnand %p4331_p13, %p4813_p0 }
 0x1a7   : > { %p4334_p6 = pneg %p4333_p1 }
 0x1a9   : > { %p4339_p9 = pnand %p4337_p5, %p4334_p6 }
 0x1ab   : > { %4342 = shalt.err (!%p4339_p9)
}
 0x1ac   : > { %s4343_s3 = scalar_lea.vmem %s5080_s2, 16  ;;  %s4350_s1 = scalar_lea.vmem %s5080_s2, 32 }
 0x1ad   : > { %p4344_p10 = scmp.ne.s32.totalorder %s5080_s2, %s4343_s3  ;;  %p4351_p4 = scmp.lt.s32.totalorder %s5080_s2, %s5080_s2 }
 0x1ae   : > { %p4352_p7 = scmp.lt.s32.totalorder %s4350_s1, %s4343_s3 }
 0x1af   : > { %p4346_p2 = pnand %p4344_p10, %p4813_p0 }
 0x1b0   : > { %p4353_p8 = por %p4352_p7, %p4351_p4 }
 0x1b1   : > { %p4347_p3 = pneg %p4346_p2 }
 0x1b3   : > { %p4354_p11 = pnand %p4353_p8, %p4347_p3 }
 0x1b5   : > { %4357 = shalt.err (!%p4354_p11)
}
 0x1b6   : > { %3654 = dma.hbm_to_vmem [thread:$0]  (!%p4797_p12), %s5581_s12, 16, %s5080_s2, [#allocation18]  }
 0x1b7   : > { %s4592_s18 = smov [#allocation22]   ;;  %s4593_s10 = smov [#allocation25]  }
 0x1b8   : > { %s828_s6 = sshll.u32 %s4592_s18, 4  ;;  %s857_s16 = sshll.u32 %s4593_s10, 4  ;;  %s829_s6 = int_to_ptr.vmem [resolvable:$true] %s828_s6  ;;  %s5124_s16 = int_to_ptr.vmem [resolvable:$true] %s857_s16 }
 0x1b9   : > { %s4358_s0 = scalar_lea.hbm %s5478_s14, 2048 }
 0x1ba   : > { %p4359_p13 = scmp.ne.s32.totalorder %s5478_s14, %s4358_s0  ;;  %p4365_p5 = scmp.lt.u32.totalorder %s4358_s0, %s5478_s14 }
 0x1bc   : > { %p4361_p1 = pnand %p4359_p13, %p4813_p0 }
 0x1be   : > { %p4362_p6 = pneg %p4361_p1 }
 0x1c0   : > { %p4367_p9 = pnand %p4365_p5, %p4362_p6 }
 0x1c2   : > { %4370 = shalt.err (!%p4367_p9)
}
 0x1c3   : > { %s4371_s30 = scalar_lea.vmem %s829_s6, 2048  ;;  %p4379_p4 = scmp.lt.s32.totalorder %s829_s6, %s829_s6 }
 0x1c4   : > { %p4372_p10 = scmp.ne.s32.totalorder %s829_s6, %s4371_s30  ;;  %p4380_p7 = scmp.lt.s32.totalorder %s4371_s30, %s4371_s30 }
 0x1c6   : > { %p4374_p2 = pnand %p4372_p10, %p4813_p0  ;;  %p4381_p8 = por %p4380_p7, %p4379_p4 }
 0x1c8   : > { %p4375_p3 = pneg %p4374_p2 }
 0x1ca   : > { %p4382_p11 = pnand %p4381_p8, %p4375_p3 }
 0x1cc   : > { %4385 = shalt.err (!%p4382_p11)
}
 0x1cd   : > { %s5582_s15 = smov 8   ;;  %s5583_s18 = smov 128  }
 0x1ce   : > { %3660 = dma.hbm_to_vmem [thread:$0]  (!%p4797_p12), %s5478_s14, 2048, %s829_s6, [#allocation21], %s5583_s18, %s5583_s18, %s5582_s15  }
 0x1cf   : > { %s4386_s7 = scalar_lea.hbm %s5481_s17, 4096 }
 0x1d0   : > { %p4387_p13 = scmp.ne.s32.totalorder %s5481_s17, %s4386_s7  ;;  %p4393_p5 = scmp.lt.u32.totalorder %s4386_s7, %s5481_s17 }
 0x1d2   : > { %p4389_p1 = pnand %p4387_p13, %p4813_p0 }
 0x1d4   : > { %p4390_p6 = pneg %p4389_p1 }
 0x1d6   : > { %p4395_p9 = pnand %p4393_p5, %p4390_p6 }
 0x1d8   : > { %4398 = shalt.err (!%p4395_p9)
}
 0x1d9   : > { %s4399_s6 = scalar_lea.vmem %s5124_s16, 4096  ;;  %p4407_p4 = scmp.lt.s32.totalorder %s5124_s16, %s5124_s16 }
 0x1da   : > { %p4400_p10 = scmp.ne.s32.totalorder %s5124_s16, %s4399_s6  ;;  %p4408_p7 = scmp.lt.s32.totalorder %s4399_s6, %s4399_s6 }
 0x1dc   : > { %p4402_p2 = pnand %p4400_p10, %p4813_p0  ;;  %p4409_p8 = por %p4408_p7, %p4407_p4 }
 0x1de   : > { %p4403_p3 = pneg %p4402_p2 }
 0x1e0   : > { %p4410_p11 = pnand %p4409_p8, %p4403_p3 }
 0x1e2   : > { %4413 = shalt.err (!%p4410_p11)
}
 0x1e3   : > { %3666 = dma.hbm_to_vmem [thread:$0]  (!%p4797_p12), %s5481_s17, 4096, %s5124_s16, [#allocation24], %s5583_s18, %s5583_s18, %s5582_s15  }
 0x1e4   : > { %s4594_s8 = smov [#allocation28]   ;;  %s4595_s7 = smov [#allocation29]  }
 0x1e5   : > { %s889_s0 = sshll.u32 %s4594_s8, 4  ;;  %s903_s3 = sshll.u32 %s4595_s7, 4  ;;  %s890_s0 = int_to_ptr.vmem [resolvable:$true] %s889_s0  ;;  %s5173_s3 = int_to_ptr.vmem [resolvable:$true] %s903_s3 }
 0x1e6   : > { %s4414_s30 = scalar_lea.hbm %s5485_s21, 1024 }
 0x1e7   : > { %p4415_p13 = scmp.ne.s32.totalorder %s5485_s21, %s4414_s30  ;;  %p4421_p5 = scmp.lt.u32.totalorder %s4414_s30, %s5485_s21 }
 0x1e9   : > { %p4417_p1 = pnand %p4415_p13, %p4813_p0 }
 0x1eb   : > { %p4418_p6 = pneg %p4417_p1 }
 0x1ed   : > { %p4423_p9 = pnand %p4421_p5, %p4418_p6 }
 0x1ef   : > { %4426 = shalt.err (!%p4423_p9)
}
 0x1f0   : > { %s4427_s15 = scalar_lea.vmem %s890_s0, 1024  ;;  %p4435_p4 = scmp.lt.s32.totalorder %s890_s0, %s890_s0 }
 0x1f1   : > { %p4428_p10 = scmp.ne.s32.totalorder %s890_s0, %s4427_s15  ;;  %p4436_p7 = scmp.lt.s32.totalorder %s4427_s15, %s4427_s15 }
 0x1f3   : > { %p4430_p2 = pnand %p4428_p10, %p4813_p0  ;;  %p4437_p8 = por %p4436_p7, %p4435_p4 }
 0x1f5   : > { %p4431_p3 = pneg %p4430_p2 }
 0x1f7   : > { %p4438_p11 = pnand %p4437_p8, %p4431_p3 }
 0x1f9   : > { %4441 = shalt.err (!%p4438_p11)
}
 0x1fa   : > { %3672 = dma.hbm_to_vmem [thread:$0]  (!%p4797_p12), %s5485_s21, 1024, %s890_s0, [#allocation27], %s5572_s23, %s5572_s23, %s5571_s26  }
 0x1fb   : > { %s4442_s7 = scalar_lea.hbm %s5486_s22, 16 }
 0x1fc   : > { %p4443_p13 = scmp.ne.s32.totalorder %s5486_s22, %s4442_s7  ;;  %p4449_p5 = scmp.lt.u32.totalorder %s4442_s7, %s5486_s22 }
 0x1fe   : > { %p4445_p1 = pnand %p4443_p13, %p4813_p0 }
 0x200   : > { %p4446_p6 = pneg %p4445_p1 }
 0x202   : > { %p4451_p9 = pnand %p4449_p5, %p4446_p6 }
 0x204   : > { %4454 = shalt.err (!%p4451_p9)
}
 0x205   : > { %s4455_s26 = scalar_lea.vmem %s5173_s3, 16  ;;  %s4462_s23 = scalar_lea.vmem %s5173_s3, 32 }
 0x206   : > { %p4456_p10 = scmp.ne.s32.totalorder %s5173_s3, %s4455_s26  ;;  %p4463_p4 = scmp.lt.s32.totalorder %s5173_s3, %s5173_s3 }
 0x207   : > { %p4464_p7 = scmp.lt.s32.totalorder %s4462_s23, %s4455_s26 }
 0x208   : > { %p4458_p2 = pnand %p4456_p10, %p4813_p0 }
 0x209   : > { %p4465_p8 = por %p4464_p7, %p4463_p4 }
 0x20a   : > { %p4459_p3 = pneg %p4458_p2 }
 0x20c   : > { %p4466_p11 = pnand %p4465_p8, %p4459_p3 }
 0x20e   : > { %4469 = shalt.err (!%p4466_p11)
}
 0x20f   : > { %3675 = dma.hbm_to_vmem [thread:$0]  (!%p4797_p12), %s5486_s22, 16, %s5173_s3, [#allocation30]  }
 0x210   : > { %p5584_p13 = scmp.ne.s32.totalorder %s5560_s11, 0 }
 0x211   : > { %p5585_p0 = scmp.eq.s32.totalorder (!%p5584_p13), %s4761_s9, 0 }
 0x212   : > { %926 = sbr.rel (%p5584_p13) target bundleno = 2597 (0xa25), region = 116 }
 0x219   : > { %4515 = dma.done.wait (%p5585_p0), [#allocation3], 1024   ;;  %p5586_p1 = pmov %p5585_p0 }
 0x21a   : > { %p5587_p6 = pmov %p5585_p0 }
 0x21b   : > { %4517 = vsyncadd (%p5586_p1), [#allocation3], 4294966272 }
 0x21c   : > { %4519 = dma.done.wait (%p5587_p6), [#allocation6], 32   ;;  %p5588_p5 = pmov %p5585_p0 }
 0x21d   : > { %p5589_p9 = pmov %p5585_p0 }
 0x21e   : > { %4521 = vsyncadd (%p5588_p5), [#allocation6], 4294967264 }
 0x21f   : > { %4523 = dma.done.wait (%p5589_p9), [#allocation9], 1040   ;;  %p5590_p12 = pmov %p5585_p0 }
 0x220   : > { %p5591_p10 = pmov %p5585_p0 }
 0x221   : > { %4525 = vsyncadd (%p5590_p12), [#allocation9], 4294966256 }
 0x222   : > { %4527 = dma.done.wait (%p5591_p10), [#allocation12], 1040   ;;  %p5592_p2 = pmov %p5585_p0 }
 0x223   : > { %p5593_p3 = pmov %p5585_p0 }
 0x224   : > { %4529 = vsyncadd (%p5592_p2), [#allocation12], 4294966256 }
 0x225   : > { %4531 = dma.done.wait (%p5593_p3), [#allocation15], 1040   ;;  %p5594_p4 = pmov %p5585_p0 }
 0x226   : > { %p5595_p7 = pmov %p5585_p0 }
 0x227   : > { %4533 = vsyncadd (%p5594_p4), [#allocation15], 4294966256 }
 0x228   : > { %4535 = dma.done.wait (%p5595_p7), [#allocation18], 1040   ;;  %p5596_p8 = pmov %p5585_p0 }
 0x229   : > { %p5597_p11 = pmov %p5585_p0 }
 0x22a   : > { %4537 = vsyncadd (%p5596_p8), [#allocation18], 4294966256 }
 0x22b   : > { %4539 = dma.done.wait (%p5597_p11), [#allocation21], 4096   ;;  %p5598_p13 = pmov %p5585_p0 }
 0x22d   : > { %4541 = vsyncadd (%p5598_p13), [#allocation21], 4294963200 }
 0x22e   : > { %4543 = dma.done.wait (%p5585_p0), [#allocation24], 6144   ;;  %p5599_p1 = pmov %p5585_p0 }
 0x22f   : > { %p5600_p6 = pmov %p5585_p0 }
 0x230   : > { %4545 = vsyncadd (%p5599_p1), [#allocation24], 4294961152 }
 0x231   : > { %4547 = dma.done.wait (%p5600_p6), [#allocation27], 3072   ;;  %p5601_p5 = pmov %p5585_p0 }
 0x232   : > { %p5602_p9 = pmov %p5585_p0 }
 0x233   : > { %4549 = vsyncadd (%p5601_p5), [#allocation27], 4294964224 }
 0x234   : > { %4551 = dma.done.wait (%p5602_p9), [#allocation30], 16   ;;  %p5603_p12 = pmov %p5585_p0 }
 0x235   : > { %v4596_v0 = vmov 0.0   ;;  %vm4597_vm0 = vmmov 0   ;;  %v3774_v1 = vld [vmem:[#allocation2] sm:$0xff]   ;;  %v3775_v2 = vld [vmem:[#allocation2 + $0x8] sm:$0xff]   ;;  %v3776_v3 = vld [vmem:[#allocation2 + $0x10] sm:$0xff]   ;;  %p1077_p10 = scmp.lt.s32.totalorder %s4761_s9, 1 }
 0x236   : > { %4553 = vsyncadd (%p5603_p12), [#allocation30], 4294967280  ;;  %3407 = vmatprep.subr.bf16.mxu0 %v4596_v0  ;;  %3423 = vmatprep.mubr.msk.bf16.mxu0 %vm4597_vm0, %v4596_v0  ;;  %s5604_s5 = sld [smem:[#allocation53_spill]]  ;;  %v3777_v5 = vld [vmem:[#allocation2 + $0x18] sm:$0xff]   ;;  %v3778_v7 = vld [vmem:[#allocation2 + $0x20] sm:$0xff]   ;;  %s5605_s30 = sld [smem:[#allocation50_spill]] }
 0x237   : > { %3427 = vmatprep.subr.bf16.mxu1 %v4596_v0  ;;  %3443 = vmatprep.mubr.msk.bf16.mxu1 %vm4597_vm0, %v4596_v0  ;;  %s1078_s3 = scalar_select %p1077_p10, %s4761_s9, 1  ;;  %v3779_v9 = vld [vmem:[#allocation2 + $0x28] sm:$0xff]   ;;  %v3780_v11 = vld [vmem:[#allocation2 + $0x30] sm:$0xff]   ;;  %v3781_v13 = vld [vmem:[#allocation2 + $0x38] sm:$0xff]  }
 0x238   : > { %3408 = vmatpush3.bf16.msra.mxu0 %v3774_v1  ;;  %v3790_v19 = vld [vmem:[#allocation8] sm:$0xff]   ;;  %v3791_v20 = vld [vmem:[#allocation8 + $0x8] sm:$0xff]   ;;  %v3792_v21 = vld [vmem:[#allocation8 + $0x10] sm:$0xff]   ;;  %s1062_s8 = sand.u32 1, %s4564_s4   ;;  %s5607_s0 = sld [smem:[#allocation66_spill]] }
 0x239   : > { %3409 = vmatprep.subr.bf16.mxu0 %v4596_v0  ;;  %s5280_s12 = sshll.u32 %s1078_s3, 3  ;;  %v3793_v22 = vld [vmem:[#allocation8 + $0x18] sm:$0xff]   ;;  %v3794_v23 = vld [vmem:[#allocation8 + $0x20] sm:$0xff]   ;;  %v3795_v24 = vld [vmem:[#allocation8 + $0x28] sm:$0xff]   ;;  %s5380_s7 = sshll.u32 %s1062_s8, 3 }
 0x23a   : > { %v3157_v25 = vld [vmem:[#allocation5] ss:$0 sm:$0xff]  ;;  %v3796_v33 = vld [vmem:[#allocation8 + $0x30] sm:$0xff]   ;;  %v3798_v35 = vld [vmem:[#allocation11] sm:$0xff]   ;;  %s1084_s25 = scalar_lea.vmem %s5488_s24, %s5280_s12  ;;  %s1064_s1 = scalar_lea.vmem [#allocation31], %s5380_s7 }
 0x23b   : > { %v3797_v34 = vld [vmem:[#allocation8 + $0x38] sm:$0xff]   ;;  %v3799_v36 = vld [vmem:[#allocation11 + $0x8] sm:$0xff]   ;;  %v3802_v39 = vld [vmem:[#allocation11 + $0x20] sm:$0xff]   ;;  %s5608_s11 = sld [smem:[#allocation67_spill]]  ;;  %s5609_s15 = sld [smem:[#allocation68_spill]] }
 0x23c   : > { %3410 = vmatpush3.bf16.msra.mxu0 %v3775_v2  ;;  %v3782_v4 = vld [vmem:[%s5604_s5] sm:$0xff]   ;;  %v3783_v6 = vld [vmem:[%s5604_s5 + $0x8] sm:$0xff]   ;;  %v3784_v8 = vld [vmem:[%s5604_s5 + $0x10] sm:$0xff]   ;;  %s1080_s6 = scalar_lea.vmem %s5605_s30, %s5280_s12  ;;  %s5610_s18 = sld [smem:[#allocation48_spill]] }
 0x23d   : > { %3411 = vmatprep.subr.bf16.mxu0 %v4596_v0  ;;  %3428 = vmatpush3.bf16.msra.mxu1 %v3782_v4  ;;  %v3785_v10 = vld [vmem:[%s5604_s5 + $0x18] sm:$0xff]   ;;  %v3786_v12 = vld [vmem:[%s5604_s5 + $0x20] sm:$0xff]   ;;  %v3787_v15 = vld [vmem:[%s5604_s5 + $0x28] sm:$0xff]   ;;  %s5611_s30 = sld [smem:[#allocation71_spill]]  ;;  %s3319_s26 = sshll.u32 %s4761_s9, 7 }
 0x23e   : > { %3429 = vmatprep.subr.bf16.mxu1 %v4596_v0  ;;  %v1094_v14 = vld [vmem:[%s1080_s6] sm:$0xff]  ;;  %v3788_v17 = vld [vmem:[%s5604_s5 + $0x30] sm:$0xff]   ;;  %v3789_v18 = vld [vmem:[%s5604_s5 + $0x38] sm:$0xff]   ;;  %s5606_s6 = sld [smem:[#allocation65_spill]]  ;;  %s2801_s23 = sshll.u32 %s1064_s1, 4  ;;  %s2802_s23 = int_to_ptr.vmem [resolvable:$true] %s2801_s23 }
 0x23f   : > { %v5306_v16 = vpack.c.bf16 %v1094_v14, %v1094_v14  ;;  %v3800_v37 = vld [vmem:[#allocation11 + $0x10] sm:$0xff]   ;;  %v3801_v38 = vld [vmem:[#allocation11 + $0x18] sm:$0xff]   ;;  %v3803_v40 = vld [vmem:[#allocation11 + $0x28] sm:$0xff]   ;;  %s5612_s27 = sld [smem:[#allocation69_spill]]  ;;  %s2777_s3 = scalar_lea.sflag [#allocation4], %s1062_s8 }
 0x240   : > { %3412 = vmatpush3.bf16.msra.mxu0 %v3776_v3  ;;  %v3804_v41 = vld [vmem:[#allocation11 + $0x30] sm:$0xff]   ;;  %v3166_v42 = vld [vmem:[#allocation7] ss:$0 sm:$0xff]  ;;  %v3806_v51 = vld [vmem:[#allocation14] sm:$0xff]   ;;  %s4470_s16 = scalar_lea.vmem %s2802_s23, 128 }
 0x241   : > { %3413 = vmatprep.subr.bf16.mxu0 %v4596_v0  ;;  %3430 = vmatpush3.bf16.msra.mxu1 %v3783_v6  ;;  %v3805_v50 = vld [vmem:[#allocation11 + $0x38] sm:$0xff]   ;;  %v3807_v52 = vld [vmem:[#allocation14 + $0x8] sm:$0xff]   ;;  %v3810_v55 = vld [vmem:[#allocation14 + $0x20] sm:$0xff]   ;;  %p4471_p2 = scmp.ne.s32.totalorder %s2802_s23, %s4470_s16 }
 0x242   : > { %3431 = vmatprep.subr.bf16.mxu1 %v4596_v0  ;;  %v3808_v53 = vld [vmem:[#allocation14 + $0x10] sm:$0xff]   ;;  %v3809_v54 = vld [vmem:[#allocation14 + $0x18] sm:$0xff]   ;;  %v3811_v56 = vld [vmem:[#allocation14 + $0x28] sm:$0xff]   ;;  %p5613_p3 = scmp.ne.s32.totalorder %s5610_s18, 0 }
 0x243   : > { %v3175_v57 = vld [vmem:[#allocation10] ss:$0 sm:$0xff]  ;;  %v3812_v1 = vld [vmem:[#allocation14 + $0x30] sm:$0xff]   ;;  %v3817_v4 = vld [vmem:[#allocation17] sm:$0xff]  }
 0x244   : > { %3414 = vmatpush3.bf16.msra.mxu0 %v3777_v5  ;;  %v3813_v2 = vld [vmem:[#allocation14 + $0x38] sm:$0xff]   ;;  %v3816_v3 = vld [vmem:[#allocation22 + $0x4] ss:$8 sps:$4 sm:$0xff]   ;;  %p4472_p4 = pnand %p4471_p2, %p5613_p3 }
 0x245   : > { %3415 = vmatprep.subr.bf16.mxu0 %v4596_v0  ;;  %3432 = vmatpush3.bf16.msra.mxu1 %v3784_v8  ;;  %v3821_v5 = vld [vmem:[#allocation17 + $0x8] sm:$0xff]   ;;  %v3825_v6 = vld [vmem:[#allocation17 + $0x10] sm:$0xff]   ;;  %v3833_v8 = vld [vmem:[#allocation17 + $0x20] sm:$0xff]  }
 0x246   : > { %3433 = vmatprep.subr.bf16.mxu1 %v4596_v0  ;;  %p4473_p7 = pneg %p4472_p4 }
 0x248   : > { %3416 = vmatpush3.bf16.msra.mxu0 %v3778_v7  ;;  %v3829_v7 = vld [vmem:[#allocation17 + $0x18] sm:$0xff]  }
 0x249   : > { %3417 = vmatprep.subr.bf16.mxu0 %v4596_v0  ;;  %3434 = vmatpush3.bf16.msra.mxu1 %v3785_v10  ;;  %v3841_v10 = vld [vmem:[#allocation17 + $0x30] sm:$0xff]  }
 0x24a   : > { %3435 = vmatprep.subr.bf16.mxu1 %v4596_v0 }
 0x24c   : > { %3418 = vmatpush3.bf16.msra.mxu0 %v3779_v9  ;;  %v3837_v9 = vld [vmem:[#allocation17 + $0x28] sm:$0xff]  }
 0x24d   : > { %3419 = vmatprep.subr.bf16.mxu0 %v4596_v0  ;;  %3436 = vmatpush3.bf16.msra.mxu1 %v3786_v12 }
 0x24e   : > { %3437 = vmatprep.subr.bf16.mxu1 %v4596_v0 }
 0x250   : > { %3420 = vmatpush3.bf16.msra.mxu0 %v3780_v11  ;;  %v3184_v11 = vld [vmem:[#allocation13] ss:$0 sm:$0xff] }
 0x251   : > { %3421 = vmatprep.subr.bf16.mxu0 %v4596_v0  ;;  %3438 = vmatpush3.bf16.msra.mxu1 %v3787_v15 }
 0x252   : > { %3439 = vmatprep.subr.bf16.mxu1 %v4596_v0 }
 0x254   : > { %3422 = vmatpush3.bf16.msra.mxu0 %v3781_v13 }
 0x255   : > { %3447 = vmatprep.subr.bf16.mxu0 %v4596_v0  ;;  %3440 = vmatpush3.bf16.msra.mxu1 %v3788_v17 }
 0x256   : > { %3441 = vmatprep.subr.bf16.mxu1 %v4596_v0 }
 0x257   : > { %3424 = vmatmul.mubr.bf16.vlgmr.msra.gmra.mrb[0].mxu0 %v5306_v16 }
 0x258   : > { %3463 = vmatprep.mubr.msk.bf16.mxu0 %vm4597_vm0, %v4596_v0  ;;  %3448 = vmatpush3.bf16.msra.mxu0 %v3790_v19  ;;  %v3814_v19 = vld [vmem:[#allocation22] ss:$8 sps:$4 sm:$0xff]  }
 0x259   : > { %3442 = vmatpush3.bf16.msra.mxu1 %v3789_v18  ;;  %3449 = vmatprep.subr.bf16.mxu0 %v4596_v0 }
 0x25a   : > { %3467 = vmatprep.subr.bf16.mxu1 %v4596_v0 }
 0x25c   : > { %3450 = vmatpush3.bf16.msra.mxu0 %v3791_v20 }
 0x25d   : > { %3451 = vmatprep.subr.bf16.mxu0 %v4596_v0 }
 0x260   : > { %3452 = vmatpush3.bf16.msra.mxu0 %v3792_v21  ;;  %v3820_v21 = vld [vmem:[#allocation22 + $0x14] ss:$8 sps:$4 sm:$0xff]  }
 0x261   : > { %3453 = vmatprep.subr.bf16.mxu0 %v4596_v0 }
 0x264   : > { %3454 = vmatpush3.bf16.msra.mxu0 %v3793_v22  ;;  %v3818_v22 = vld [vmem:[#allocation22 + $0x10] ss:$8 sps:$4 sm:$0xff]  }
 0x265   : > { %3455 = vmatprep.subr.bf16.mxu0 %v4596_v0 }
 0x268   : > { %3456 = vmatpush3.bf16.msra.mxu0 %v3794_v23  ;;  %v3824_v23 = vld [vmem:[#allocation22 + $0x24] ss:$8 sps:$4 sm:$0xff]  }
 0x269   : > { %3457 = vmatprep.subr.bf16.mxu0 %v4596_v0 }
 0x26c   : > { %3458 = vmatpush3.bf16.msra.mxu0 %v3795_v24  ;;  %v3822_v24 = vld [vmem:[#allocation22 + $0x20] ss:$8 sps:$4 sm:$0xff]  }
 0x26d   : > { %3459 = vmatprep.subr.bf16.mxu0 %v4596_v0 }
 0x270   : > { %3460 = vmatpush3.bf16.msra.mxu0 %v3796_v33  ;;  %v3844_v33 = vld [vmem:[#allocation22 + $0x74] ss:$8 sps:$4 sm:$0xff]  }
 0x271   : > { %3461 = vmatprep.subr.bf16.mxu0 %v4596_v0 }
 0x274   : > { %3462 = vmatpush3.bf16.msra.mxu0 %v3797_v34  ;;  %v3842_v34 = vld [vmem:[#allocation22 + $0x70] ss:$8 sps:$4 sm:$0xff]  }
 0x275   : > { %3487 = vmatprep.subr.bf16.mxu0 %v4596_v0 }
 0x32a   : > { %v1201_v26 = vpop.f32.mrb[0].mxu0 }
 0x32b   : > { %v1202_v27 = vadd.f32 %v3157_v25, %v1201_v26  ;;  %v3425_v28 = vpop.f32.mrb[1].mxu0  ;;  %v3828_v25 = vld [vmem:[#allocation22 + $0x34] ss:$8 sps:$4 sm:$0xff]   ;;  %v3826_v26 = vld [vmem:[#allocation22 + $0x30] ss:$8 sps:$4 sm:$0xff]  }
 0x32c   : > { %v1204_v29 = vpop.f32.mrb[2].mxu0  ;;  %v3830_v28 = vld [vmem:[#allocation22 + $0x40] ss:$8 sps:$4 sm:$0xff]  }
 0x32d   : > { %v1207_v30 = vmax.f32 %v1202_v27, 0.0  ;;  %v3426_v31 = vpop.f32.mrb[3].mxu0  ;;  %v3832_v27 = vld [vmem:[#allocation22 + $0x44] ss:$8 sps:$4 sm:$0xff]   ;;  %v3836_v29 = vld [vmem:[#allocation22 + $0x54] ss:$8 sps:$4 sm:$0xff]  }
 0x32e   : > { %v3840_v31 = vld [vmem:[#allocation22 + $0x64] ss:$8 sps:$4 sm:$0xff]  }
 0x32f   : > { %v1208_v32 = vpack.c.bf16 %v1207_v30, %v1207_v30  ;;  %v3834_v30 = vld [vmem:[#allocation22 + $0x50] ss:$8 sps:$4 sm:$0xff]  }
 0x331   : > { %3444 = vmatmul.mubr.bf16.vlgmr.msra.gmra.mrb[0].mxu1 %v1208_v32  ;;  %v3838_v32 = vld [vmem:[#allocation22 + $0x60] ss:$8 sps:$4 sm:$0xff]  }
 0x332   : > { %3483 = vmatprep.mubr.msk.bf16.mxu1 %vm4597_vm0, %v4596_v0  ;;  %3468 = vmatpush3.bf16.msra.mxu1 %v3798_v35  ;;  %v1808_v35 = vshll.u32 %v5306_v16, 16 }
 0x333   : > { %3469 = vmatprep.subr.bf16.mxu1 %v4596_v0 }
 0x336   : > { %3470 = vmatpush3.bf16.msra.mxu1 %v3799_v36  ;;  %v1806_v36 = vshrl.u32 %v5306_v16, 16 }
 0x337   : > { %3471 = vmatprep.subr.bf16.mxu1 %v4596_v0 }
 0x33a   : > { %3472 = vmatpush3.bf16.msra.mxu1 %v3800_v37  ;;  %v1810_v37 = vrot.slane %v1808_v35, 1  ;;  %v3909_v35 = vld [vmem:[#allocation25 + $0x50] ss:$8 sps:$4 sm:$0xff]  }
 0x33b   : > { %3473 = vmatprep.subr.bf16.mxu1 %v4596_v0 }
 0x33e   : > { %3474 = vmatpush3.bf16.msra.mxu1 %v3801_v38  ;;  %v3845_v38 = vld [vmem:[#allocation17 + $0x38] sm:$0xff]  }
 0x33f   : > { %3475 = vmatprep.subr.bf16.mxu1 %v4596_v0 }
 0x342   : > { %3476 = vmatpush3.bf16.msra.mxu1 %v3802_v39  ;;  %v3848_v39 = vld [vmem:[#allocation23 + $0x4] ss:$8 sps:$4 sm:$0xff]  }
 0x343   : > { %3477 = vmatprep.subr.bf16.mxu1 %v4596_v0 }
 0x346   : > { %3478 = vmatpush3.bf16.msra.mxu1 %v3803_v40  ;;  %v3846_v40 = vld [vmem:[#allocation23] ss:$8 sps:$4 sm:$0xff]  }
 0x347   : > { %3479 = vmatprep.subr.bf16.mxu1 %v4596_v0 }
 0x34a   : > { %3480 = vmatpush3.bf16.msra.mxu1 %v3804_v41  ;;  %v1811_v41 = vor.u32 %v1810_v37, %v1806_v36  ;;  %v3914_v37 = vld [vmem:[#allocation25 + $0x64] ss:$8 sps:$4 sm:$0xff]  }
 0x34b   : > { %3481 = vmatprep.subr.bf16.mxu1 %v4596_v0 }
 0x34e   : > { %3482 = vmatpush3.bf16.msra.mxu1 %v3805_v50  ;;  %v3872_v50 = vld [vmem:[#allocation23 + $0x44] ss:$8 sps:$4 sm:$0xff]  }
 0x34f   : > { %3507 = vmatprep.subr.bf16.mxu1 %v4596_v0 }
 0x404   : > { %v1314_v43 = vpop.f32.mrb[0].mxu1 }
 0x405   : > { %v1315_v44 = vadd.f32 %v3166_v42, %v1314_v43  ;;  %v3445_v45 = vpop.f32.mrb[1].mxu1  ;;  %v4598_v42 = vmov 0   ;;  %v3851_v43 = vld [vmem:[#allocation20 + $0x4] ss:$8 sps:$4 sm:$0xff]  }
 0x406   : > { %v1317_v46 = vpop.f32.mrb[2].mxu1  ;;  %v3852_v45 = vld [vmem:[#allocation23 + $0x10] ss:$8 sps:$4 sm:$0xff]  }
 0x407   : > { %v1320_v47 = vmax.f32 %v1315_v44, 0.0  ;;  %v3446_v48 = vpop.f32.mrb[3].mxu1  ;;  %v3854_v44 = vld [vmem:[#allocation23 + $0x14] ss:$8 sps:$4 sm:$0xff]   ;;  %v3860_v46 = vld [vmem:[#allocation23 + $0x24] ss:$8 sps:$4 sm:$0xff]  }
 0x408   : > { %v3866_v48 = vld [vmem:[#allocation23 + $0x34] ss:$8 sps:$4 sm:$0xff]  }
 0x409   : > { %v1321_v49 = vpack.c.bf16 %v1320_v47, %v1320_v47  ;;  %v3858_v47 = vld [vmem:[#allocation23 + $0x20] ss:$8 sps:$4 sm:$0xff]  }
 0x40b   : > { %3464 = vmatmul.mubr.bf16.vlgmr.msra.gmra.mrb[4].mxu0 %v1321_v49  ;;  %v3864_v49 = vld [vmem:[#allocation23 + $0x30] ss:$8 sps:$4 sm:$0xff]  }
 0x40c   : > { %3503 = vmatprep.mubr.msk.bf16.mxu0 %vm4597_vm0, %v4596_v0  ;;  %3488 = vmatpush3.bf16.msra.mxu0 %v3806_v51  ;;  %v3870_v51 = vld [vmem:[#allocation23 + $0x40] ss:$8 sps:$4 sm:$0xff]  }
 0x40d   : > { %3489 = vmatprep.subr.bf16.mxu0 %v4596_v0 }
 0x410   : > { %3490 = vmatpush3.bf16.msra.mxu0 %v3807_v52  ;;  %v3878_v52 = vld [vmem:[#allocation23 + $0x54] ss:$8 sps:$4 sm:$0xff]  }
 0x411   : > { %3491 = vmatprep.subr.bf16.mxu0 %v4596_v0 }
 0x414   : > { %3492 = vmatpush3.bf16.msra.mxu0 %v3808_v53  ;;  %v3876_v53 = vld [vmem:[#allocation23 + $0x50] ss:$8 sps:$4 sm:$0xff]  }
 0x415   : > { %3493 = vmatprep.subr.bf16.mxu0 %v4596_v0 }
 0x418   : > { %3494 = vmatpush3.bf16.msra.mxu0 %v3809_v54  ;;  %v3884_v54 = vld [vmem:[#allocation23 + $0x64] ss:$8 sps:$4 sm:$0xff]  }
 0x419   : > { %3495 = vmatprep.subr.bf16.mxu0 %v4596_v0 }
 0x41c   : > { %3496 = vmatpush3.bf16.msra.mxu0 %v3810_v55  ;;  %v3882_v55 = vld [vmem:[#allocation23 + $0x60] ss:$8 sps:$4 sm:$0xff]  }
 0x41d   : > { %3497 = vmatprep.subr.bf16.mxu0 %v4596_v0 }
 0x420   : > { %3498 = vmatpush3.bf16.msra.mxu0 %v3811_v56  ;;  %v3890_v56 = vld [vmem:[#allocation23 + $0x74] ss:$8 sps:$4 sm:$0xff]  }
 0x421   : > { %3499 = vmatprep.subr.bf16.mxu0 %v4596_v0 }
 0x424   : > { %3500 = vmatpush3.bf16.msra.mxu0 %v3812_v1 }
 0x425   : > { %3501 = vmatprep.subr.bf16.mxu0 %v4596_v0 }
 0x428   : > { %3502 = vmatpush3.bf16.msra.mxu0 %v3813_v2 }
 0x429   : > { %1893 = vmatprep.subr.bf16.mxu0 %v3816_v3 }
 0x4de   : > { %v1427_v58 = vpop.f32.mrb[4].mxu0 }
 0x4df   : > { %v5351_v59 = vadd.f32 %v3175_v57, %v1427_v58  ;;  %v3465_v60 = vpop.f32.mrb[5].mxu0  ;;  %v3888_v57 = vld [vmem:[#allocation23 + $0x70] ss:$8 sps:$4 sm:$0xff]   ;;  %v2071_v58 = vrot.slane %v1806_v36, 3  ;;  %v3912_v36 = vld [vmem:[#allocation25 + $0x60] ss:$8 sps:$4 sm:$0xff]  }
 0x4e0   : > { %v1430_v61 = vpop.f32.mrb[6].mxu0  ;;  %v3193_v60 = vld [vmem:[#allocation16] ss:$0 sm:$0xff] }
 0x4e1   : > { %1433 = vst [vmem:[%s1084_s25] sm:$0xff] %v5351_v59  ;;  %v1434_v62 = vpack.c.bf16 %v5351_v59, %v5351_v59  ;;  %v3466_v63 = vpop.f32.mrb[7].mxu0 }
 0x4e3   : > { %3484 = vmatmul.mubr.bf16.vlgmr.msra.gmra.mrb[4].mxu1 %v1434_v62 }
 0x4e4   : > { %3523 = vmatprep.mubr.msk.bf16.mxu1 %vm4597_vm0, %v4596_v0  ;;  %3508 = vmatpush3.bf16.msra.mxu1 %v3817_v4  ;;  %v3849_v4 = vld [vmem:[#allocation20] ss:$8 sps:$4 sm:$0xff]  }
 0x4e5   : > { %3509 = vmatprep.subr.bf16.mxu1 %v4596_v0 }
 0x4e8   : > { %3510 = vmatpush3.bf16.msra.mxu1 %v3821_v5 }
 0x4e9   : > { %3511 = vmatprep.subr.bf16.mxu1 %v4596_v0 }
 0x4ec   : > { %3512 = vmatpush3.bf16.msra.mxu1 %v3825_v6  ;;  %v3857_v6 = vld [vmem:[#allocation20 + $0x14] ss:$8 sps:$4 sm:$0xff]  }
 0x4ed   : > { %3513 = vmatprep.subr.bf16.mxu1 %v4596_v0 }
 0x4f0   : > { %3514 = vmatpush3.bf16.msra.mxu1 %v3829_v7  ;;  %v3855_v7 = vld [vmem:[#allocation20 + $0x10] ss:$8 sps:$4 sm:$0xff]  }
 0x4f1   : > { %3515 = vmatprep.subr.bf16.mxu1 %v4596_v0 }
 0x4f4   : > { %3516 = vmatpush3.bf16.msra.mxu1 %v3833_v8  ;;  %v3863_v8 = vld [vmem:[#allocation20 + $0x24] ss:$8 sps:$4 sm:$0xff]  }
 0x4f5   : > { %3517 = vmatprep.subr.bf16.mxu1 %v4596_v0 }
 0x4f8   : > { %3518 = vmatpush3.bf16.msra.mxu1 %v3837_v9  ;;  %v3861_v9 = vld [vmem:[#allocation20 + $0x20] ss:$8 sps:$4 sm:$0xff]  }
 0x4f9   : > { %3519 = vmatprep.subr.bf16.mxu1 %v4596_v0 }
 0x4fc   : > { %3520 = vmatpush3.bf16.msra.mxu1 %v3841_v10  ;;  %v3869_v10 = vld [vmem:[#allocation20 + $0x34] ss:$8 sps:$4 sm:$0xff]  }
 0x4fd   : > { %3521 = vmatprep.subr.bf16.mxu1 %v4596_v0 }
 0x500   : > { %3522 = vmatpush3.bf16.msra.mxu1 %v3845_v38  ;;  %v3917_v38 = vld [vmem:[#allocation25 + $0x74] ss:$8 sps:$4 sm:$0xff]  }
 0x501   : > { %2014 = vmatprep.subr.bf16.mxu1 %v3851_v43  ;;  %v3921_v43 = vld [vmem:[#allocation25 + $0x90] ss:$8 sps:$4 sm:$0xff]  }
 0x5b6   : > { %v1540_v12 = vpop.f32.mrb[4].mxu1 }
 0x5b7   : > { %v1541_v13 = vadd.f32 %v3184_v11, %v1540_v12  ;;  %v3485_v14 = vpop.f32.mrb[5].mxu1  ;;  %v3867_v11 = vld [vmem:[#allocation20 + $0x30] ss:$8 sps:$4 sm:$0xff]   ;;  %v3875_v12 = vld [vmem:[#allocation20 + $0x44] ss:$8 sps:$4 sm:$0xff]  }
 0x5b8   : > { %v1543_v15 = vpop.f32.mrb[6].mxu1  ;;  %v3881_v14 = vld [vmem:[#allocation20 + $0x54] ss:$8 sps:$4 sm:$0xff]  }
 0x5b9   : > { %v1546_v17 = vmax.f32 %v1541_v13, 0.0  ;;  %v3486_v18 = vpop.f32.mrb[7].mxu1  ;;  %v3873_v13 = vld [vmem:[#allocation20 + $0x40] ss:$8 sps:$4 sm:$0xff]   ;;  %v3879_v15 = vld [vmem:[#allocation20 + $0x50] ss:$8 sps:$4 sm:$0xff]  }
 0x5ba   : > { %v3885_v18 = vld [vmem:[#allocation20 + $0x60] ss:$8 sps:$4 sm:$0xff]  }
 0x5bb   : > { %v1547_v20 = vpack.c.bf16 %v1546_v17, %v1546_v17  ;;  %v3887_v17 = vld [vmem:[#allocation20 + $0x64] ss:$8 sps:$4 sm:$0xff]  }
 0x5bd   : > { %3504 = vmatmul.mubr.bf16.vlgmr.msra.gmra.mrb[8].mxu0 %v1547_v20  ;;  %v3891_v20 = vld [vmem:[#allocation20 + $0x70] ss:$8 sps:$4 sm:$0xff]  }
 0x5be   : > { %1894 = vmatpush1.bf16.msra.mxu0 %v3814_v19  ;;  %1925 = vmatprep.mubr.bf16.mxu0 %v4598_v42  ;;  %v3893_v19 = vld [vmem:[#allocation20 + $0x74] ss:$8 sps:$4 sm:$0xff]  }
 0x5bf   : > { %1895 = vmatprep.subr.bf16.mxu0 %v3820_v21  ;;  %v3896_v21 = vld [vmem:[#allocation25 + $0x4] ss:$8 sps:$4 sm:$0xff]  }
 0x5c2   : > { %1896 = vmatpush1.bf16.msra.mxu0 %v3818_v22  ;;  %v3894_v22 = vld [vmem:[#allocation25] ss:$8 sps:$4 sm:$0xff]  }
 0x5c3   : > { %1897 = vmatprep.subr.bf16.mxu0 %v3824_v23  ;;  %v3899_v23 = vld [vmem:[#allocation25 + $0x14] ss:$8 sps:$4 sm:$0xff]  }
 0x5c6   : > { %1898 = vmatpush1.bf16.msra.mxu0 %v3822_v24  ;;  %v3897_v24 = vld [vmem:[#allocation25 + $0x10] ss:$8 sps:$4 sm:$0xff]  }
 0x5c7   : > { %1899 = vmatprep.subr.bf16.mxu0 %v3828_v25  ;;  %v3902_v25 = vld [vmem:[#allocation25 + $0x24] ss:$8 sps:$4 sm:$0xff]  }
 0x5ca   : > { %1900 = vmatpush1.bf16.msra.mxu0 %v3826_v26  ;;  %v3900_v26 = vld [vmem:[#allocation25 + $0x20] ss:$8 sps:$4 sm:$0xff]  }
 0x5cb   : > { %1901 = vmatprep.subr.bf16.mxu0 %v3832_v27  ;;  %v3905_v27 = vld [vmem:[#allocation25 + $0x34] ss:$8 sps:$4 sm:$0xff]  }
 0x5ce   : > { %1902 = vmatpush1.bf16.msra.mxu0 %v3830_v28  ;;  %v3903_v28 = vld [vmem:[#allocation25 + $0x30] ss:$8 sps:$4 sm:$0xff]  }
 0x5cf   : > { %1903 = vmatprep.subr.bf16.mxu0 %v3836_v29  ;;  %v3908_v29 = vld [vmem:[#allocation25 + $0x44] ss:$8 sps:$4 sm:$0xff]  }
 0x5d2   : > { %1904 = vmatpush1.bf16.msra.mxu0 %v3834_v30  ;;  %v3906_v30 = vld [vmem:[#allocation25 + $0x40] ss:$8 sps:$4 sm:$0xff]  }
 0x5d3   : > { %1905 = vmatprep.subr.bf16.mxu0 %v3840_v31 }
 0x5d6   : > { %1906 = vmatpush1.bf16.msra.mxu0 %v3838_v32 }
 0x5d7   : > { %1907 = vmatprep.subr.bf16.mxu0 %v3844_v33  ;;  %v3911_v33 = vld [vmem:[#allocation25 + $0x54] ss:$8 sps:$4 sm:$0xff]  }
 0x5da   : > { %1908 = vmatpush1.bf16.msra.mxu0 %v3842_v34 }
 0x5db   : > { %2153 = vmatprep.subr.bf16.mxu0 %v3848_v39  ;;  %v3915_v39 = vld [vmem:[#allocation25 + $0x70] ss:$8 sps:$4 sm:$0xff]  }
 0x5dd   : > { %1926 = vmatmul.mubr.bf16.vlgmr.msra.gmra.mrb[12].mxu0 %v1811_v41  ;;  %v3918_v41 = vld [vmem:[#allocation25 + $0x80] ss:$8 sps:$4 sm:$0xff]  }
 0x5de   : > { %2154 = vmatpush1.bf16.msra.mxu0 %v3846_v40  ;;  %2185 = vmatprep.mubr.bf16.mxu0 %v4598_v42  ;;  %v3920_v40 = vld [vmem:[#allocation25 + $0x84] ss:$8 sps:$4 sm:$0xff]  }
 0x5df   : > { %2155 = vmatprep.subr.bf16.mxu0 %v3854_v44  ;;  %v3926_v44 = vld [vmem:[#allocation25 + $0xa4] ss:$8 sps:$4 sm:$0xff]  }
 0x5e2   : > { %2156 = vmatpush1.bf16.msra.mxu0 %v3852_v45  ;;  %v3924_v45 = vld [vmem:[#allocation25 + $0xa0] ss:$8 sps:$4 sm:$0xff]  }
 0x5e3   : > { %2157 = vmatprep.subr.bf16.mxu0 %v3860_v46  ;;  %v3929_v46 = vld [vmem:[#allocation25 + $0xb4] ss:$8 sps:$4 sm:$0xff]  }
 0x5e6   : > { %2158 = vmatpush1.bf16.msra.mxu0 %v3858_v47  ;;  %v3927_v47 = vld [vmem:[#allocation25 + $0xb0] ss:$8 sps:$4 sm:$0xff]  }
 0x5e7   : > { %2159 = vmatprep.subr.bf16.mxu0 %v3866_v48  ;;  %v3932_v48 = vld [vmem:[#allocation25 + $0xc4] ss:$8 sps:$4 sm:$0xff]  }
 0x5ea   : > { %2160 = vmatpush1.bf16.msra.mxu0 %v3864_v49  ;;  %v3930_v49 = vld [vmem:[#allocation25 + $0xc0] ss:$8 sps:$4 sm:$0xff]  }
 0x5eb   : > { %2161 = vmatprep.subr.bf16.mxu0 %v3872_v50 }
 0x5ee   : > { %2162 = vmatpush1.bf16.msra.mxu0 %v3870_v51 }
 0x5ef   : > { %2163 = vmatprep.subr.bf16.mxu0 %v3878_v52 }
 0x5f2   : > { %2164 = vmatpush1.bf16.msra.mxu0 %v3876_v53  ;;  %v3935_v53 = vld [vmem:[#allocation25 + $0xd4] ss:$8 sps:$4 sm:$0xff]  }
 0x5f3   : > { %2165 = vmatprep.subr.bf16.mxu0 %v3884_v54 }
 0x5f6   : > { %2166 = vmatpush1.bf16.msra.mxu0 %v3882_v55  ;;  %v3933_v55 = vld [vmem:[#allocation25 + $0xd0] ss:$8 sps:$4 sm:$0xff]  }
 0x5f7   : > { %2167 = vmatprep.subr.bf16.mxu0 %v3890_v56  ;;  %v3938_v56 = vld [vmem:[#allocation25 + $0xe4] ss:$8 sps:$4 sm:$0xff]  }
 0x5fa   : > { %2168 = vmatpush1.bf16.msra.mxu0 %v3888_v57  ;;  %v3936_v57 = vld [vmem:[#allocation25 + $0xe0] ss:$8 sps:$4 sm:$0xff]  }
 0x5fd   : > { %2186 = vmatmul.mubr.bf16.vlgmr.msra.gmra.mrb[16].mxu0 %v2071_v58  ;;  %v3941_v58 = vld [vmem:[#allocation25 + $0xf4] ss:$8 sps:$4 sm:$0xff]  }
 0x690   : > { %v1653_v61 = vpop.f32.mrb[8].mxu0 }
 0x691   : > { %v1654_v62 = vadd.f32 %v3193_v60, %v1653_v61  ;;  %v3505_v63 = vpop.f32.mrb[9].mxu0  ;;  %v3939_v60 = vld [vmem:[#allocation25 + $0xf0] ss:$8 sps:$4 sm:$0xff]   ;;  %v3942_v61 = vld [vmem:[#allocation26 + $0x40] sm:$0xff]  }
 0x692   : > { %v1656_v1 = vpop.f32.mrb[10].mxu0  ;;  %v3944_v63 = vld [vmem:[#allocation26 + $0x48] sm:$0xff]   ;;  %3376 = vmatprep.subr.bf16.mxu0 %v3942_v61  ;;  %v3962_v61 = vld [vmem:[#allocation28 + $0x20] sm:$0xff]  }
 0x693   : > { %v1659_v2 = vmax.f32 %v1654_v62, 0.0  ;;  %v3506_v3 = vpop.f32.mrb[11].mxu0  ;;  %v3943_v62 = vld [vmem:[#allocation26] sm:$0xff]   ;;  %v3945_v1 = vld [vmem:[#allocation26 + $0x8] sm:$0xff]  }
 0x694   : > { %3377 = vmatpush3.bf16.msra.mxu0 %v3943_v62  ;;  %v3947_v3 = vld [vmem:[#allocation26 + $0x10] sm:$0xff]   ;;  %v3963_v62 = vld [vmem:[#allocation28 + $0x28] sm:$0xff]  }
 0x695   : > { %v1660_v5 = vpack.c.bf16 %v1659_v2, %v1659_v2  ;;  %3378 = vmatprep.subr.bf16.mxu0 %v3944_v63  ;;  %v3946_v2 = vld [vmem:[#allocation26 + $0x50] sm:$0xff]  }
 0x696   : > { %v3964_v63 = vld [vmem:[#allocation28 + $0x30] sm:$0xff]  }
 0x697   : > { %3524 = vmatmul.mubr.bf16.vlgmr.msra.gmra.mrb[8].mxu1 %v1660_v5  ;;  %v3949_v5 = vld [vmem:[#allocation26 + $0x18] sm:$0xff]  }
 0x698   : > { %2015 = vmatpush1.bf16.msra.mxu1 %v3849_v4  ;;  %2046 = vmatprep.mubr.bf16.mxu1 %v4598_v42  ;;  %v3923_v42 = vld [vmem:[#allocation25 + $0x94] ss:$8 sps:$4 sm:$0xff]  }
 0x699   : > { %2016 = vmatprep.subr.bf16.mxu1 %v3857_v6  ;;  %3379 = vmatpush3.bf16.msra.mxu0 %v3945_v1  ;;  %v3948_v4 = vld [vmem:[#allocation26 + $0x58] sm:$0xff]   ;;  %v3950_v6 = vld [vmem:[#allocation26 + $0x60] sm:$0xff]  }
 0x69a   : > { %3380 = vmatprep.subr.bf16.mxu0 %v3946_v2  ;;  %v3965_v1 = vld [vmem:[#allocation28 + $0x38] sm:$0xff]  }
 0x69c   : > { %2017 = vmatpush1.bf16.msra.mxu1 %v3855_v7  ;;  %v3951_v7 = vld [vmem:[#allocation26 + $0x20] sm:$0xff]  }
 0x69d   : > { %2018 = vmatprep.subr.bf16.mxu1 %v3863_v8  ;;  %3381 = vmatpush3.bf16.msra.mxu0 %v3947_v3  ;;  %v3952_v8 = vld [vmem:[#allocation26 + $0x68] sm:$0xff]   ;;  %v3291_v3 = vld [vmem:[%s5608_s11] ss:$0 sm:$0xff]  ;;  %s5422_s11 = scalar_lea.hbm %s5612_s27, %s3319_s26 }
 0x69e   : > { %3382 = vmatprep.subr.bf16.mxu0 %v3948_v4 }
 0x6a0   : > { %2019 = vmatpush1.bf16.msra.mxu1 %v3861_v9  ;;  %v3953_v9 = vld [vmem:[#allocation26 + $0x28] sm:$0xff]  }
 0x6a1   : > { %2020 = vmatprep.subr.bf16.mxu1 %v3869_v10  ;;  %3383 = vmatpush3.bf16.msra.mxu0 %v3949_v5  ;;  %v3202_v10 = vld [vmem:[#allocation19] ss:$0 sm:$0xff] }
 0x6a2   : > { %3384 = vmatprep.subr.bf16.mxu0 %v3950_v6 }
 0x6a4   : > { %2021 = vmatpush1.bf16.msra.mxu1 %v3867_v11 }
 0x6a5   : > { %2022 = vmatprep.subr.bf16.mxu1 %v3875_v12  ;;  %3385 = vmatpush3.bf16.msra.mxu0 %v3951_v7  ;;  %v3317_v7 = vld [vmem:[%s5609_s15] ss:$0 sm:$0xff]  ;;  %s4599_s15 = smov [#allocation31]  }
 0x6a6   : > { %3386 = vmatprep.subr.bf16.mxu0 %v3952_v8  ;;  %s4474_s25 = sshll.u32 %s4599_s15, 4  ;;  %s4475_s25 = int_to_ptr.vmem [resolvable:$false] %s4474_s25 }
 0x6a7   : > { %s4476_s2 = scalar_lea.vmem %s4475_s25, 256  ;;  %p4477_p8 = scmp.lt.s32.totalorder %s2802_s23, %s4475_s25 }
 0x6a8   : > { %2023 = vmatpush1.bf16.msra.mxu1 %v3873_v13  ;;  %p4478_p11 = scmp.lt.s32.totalorder %s4476_s2, %s4470_s16 }
 0x6a9   : > { %2024 = vmatprep.subr.bf16.mxu1 %v3881_v14  ;;  %3387 = vmatpush3.bf16.msra.mxu0 %v3953_v9  ;;  %v2766_v9 = vmul.f32 %v3317_v7, %v5351_v59 }
 0x6aa   : > { %p4479_p13 = por %p4478_p11, %p4477_p8 }
 0x6ac   : > { %2025 = vmatpush1.bf16.msra.mxu1 %v3879_v15  ;;  %p4480_p0 = pnand %p4479_p13, %p4473_p7 }
 0x6ad   : > { %2026 = vmatprep.subr.bf16.mxu1 %v3887_v17  ;;  %v2194_v17 = vlaneseq }
 0x6b0   : > { %2027 = vmatpush1.bf16.msra.mxu1 %v3885_v18  ;;  %v5369_v31 = vpop.f32.mrb[12].mxu0  ;;  %v2195_v18 = vshrl.u32 %v2194_v17, 7 }
 0x6b1   : > { %2028 = vmatprep.subr.bf16.mxu1 %v3893_v19  ;;  %v5371_v32 = vpop.f32.mrb[13].mxu0 }
 0x6b2   : > { %v2196_v19 = vsub.s32 0, %v2195_v18 }
 0x6b4   : > { %2029 = vmatpush1.bf16.msra.mxu1 %v3891_v20  ;;  %v2204_v20 = vld [vmem:[%s5606_s6] sm:$0x3]  ;;  %s1092_s6 = scalar_lea.vmem %s5611_s30, %s5280_s12 }
 0x6b5   : > { %2426 = vmatprep.subr.bf16.mxu1 %v3896_v21  ;;  %v2212_v21 = vsub.s32 1, %v2195_v18 }
 0x6b7   : > { %2047 = vmatmul.mubr.bf16.vlgmr.msra.gmra.mrb[12].mxu1 %v5306_v16  ;;  %v1931_v16 = vpop.f32.mrb[14].mxu0 }
 0x6b8   : > { %2427 = vmatpush1.bf16.msra.mxu1 %v3894_v22  ;;  %v1932_v34 = vpop.f32.mrb[15].mxu0 }
 0x6b9   : > { %2428 = vmatprep.subr.bf16.mxu1 %v3899_v23 }
 0x6bc   : > { %2429 = vmatpush1.bf16.msra.mxu1 %v3897_v24 }
 0x6bd   : > { %2430 = vmatprep.subr.bf16.mxu1 %v3902_v25 }
 0x6c0   : > { %2431 = vmatpush1.bf16.msra.mxu1 %v3900_v26  ;;  %v2209_v26 = vrot.slane %v2204_v20, %v2196_v19 }
 0x6c1   : > { %2432 = vmatprep.subr.bf16.mxu1 %v3905_v27 }
 0x6c4   : > { %2433 = vmatpush1.bf16.msra.mxu1 %v3903_v28 }
 0x6c5   : > { %2434 = vmatprep.subr.bf16.mxu1 %v3908_v29  ;;  %v2213_v29 = vrot.slane %v2204_v20, %v2212_v21 }
 0x6c8   : > { %2435 = vmatpush1.bf16.msra.mxu1 %v3906_v30 }
 0x6c9   : > { %2436 = vmatprep.subr.bf16.mxu1 %v3911_v33 }
 0x6cc   : > { %2437 = vmatpush1.bf16.msra.mxu1 %v3909_v35 }
 0x6cd   : > { %2438 = vmatprep.subr.bf16.mxu1 %v3914_v37 }
 0x6d0   : > { %2439 = vmatpush1.bf16.msra.mxu1 %v3912_v36  ;;  %v5373_v50 = vpop.f32.mrb[16].mxu0 }
 0x6d1   : > { %2440 = vmatprep.subr.bf16.mxu1 %v3917_v38  ;;  %v5375_v51 = vpop.f32.mrb[17].mxu0  ;;  %v2197_v22 = vrot.slane %v5373_v50, %v2196_v19 }
 0x6d2   : > { %v2191_v52 = vpop.f32.mrb[18].mxu0  ;;  %v2201_v23 = vrot.slane %v5375_v51, %v2196_v19 }
 0x6d3   : > { %v2192_v54 = vpop.f32.mrb[19].mxu0 }
 0x6d4   : > { %2441 = vmatpush1.bf16.msra.mxu1 %v3915_v39 }
 0x6d5   : > { %2442 = vmatprep.subr.bf16.mxu1 %v3920_v40 }
 0x6d8   : > { %2443 = vmatpush1.bf16.msra.mxu1 %v3918_v41  ;;  %v3954_v41 = vld [vmem:[#allocation26 + $0x70] sm:$0xff]  }
 0x6d9   : > { %2444 = vmatprep.subr.bf16.mxu1 %v3923_v42  ;;  %v3955_v42 = vld [vmem:[#allocation26 + $0x30] sm:$0xff]   ;;  %3388 = vmatprep.subr.bf16.mxu0 %v3954_v41 }
 0x6da   : > { %3389 = vmatpush3.bf16.msra.mxu0 %v3955_v42 }
 0x6dc   : > { %2445 = vmatpush1.bf16.msra.mxu1 %v3921_v43  ;;  %v3957_v43 = vld [vmem:[#allocation26 + $0x38] sm:$0xff]  }
 0x6dd   : > { %2446 = vmatprep.subr.bf16.mxu1 %v3926_v44 }
 0x6e0   : > { %2447 = vmatpush1.bf16.msra.mxu1 %v3924_v45 }
 0x6e1   : > { %2448 = vmatprep.subr.bf16.mxu1 %v3929_v46 }
 0x6e4   : > { %2449 = vmatpush1.bf16.msra.mxu1 %v3927_v47 }
 0x6e5   : > { %2450 = vmatprep.subr.bf16.mxu1 %v3932_v48 }
 0x6e8   : > { %2451 = vmatpush1.bf16.msra.mxu1 %v3930_v49 }
 0x6e9   : > { %2452 = vmatprep.subr.bf16.mxu1 %v3935_v53 }
 0x6ec   : > { %2453 = vmatpush1.bf16.msra.mxu1 %v3933_v55  ;;  %v3958_v55 = vld [vmem:[#allocation28] sm:$0xff]  }
 0x6ed   : > { %2454 = vmatprep.subr.bf16.mxu1 %v3938_v56 }
 0x6f0   : > { %2455 = vmatpush1.bf16.msra.mxu1 %v3936_v57  ;;  %v3959_v57 = vld [vmem:[#allocation28 + $0x8] sm:$0xff]  }
 0x6f1   : > { %2456 = vmatprep.subr.bf16.mxu1 %v3941_v58  ;;  %v3960_v58 = vld [vmem:[#allocation28 + $0x10] sm:$0xff]  }
 0x6f4   : > { %2457 = vmatpush1.bf16.msra.mxu1 %v3939_v60  ;;  %v3961_v60 = vld [vmem:[#allocation28 + $0x18] sm:$0xff]  }
 0x76a   : > { %v1766_v11 = vpop.f32.mrb[8].mxu1 }
 0x76b   : > { %v1767_v12 = vadd.f32 %v3202_v10, %v1766_v11  ;;  %v3525_v13 = vpop.f32.mrb[9].mxu1 }
 0x76c   : > { %v1769_v14 = vpop.f32.mrb[10].mxu1 }
 0x76d   : > { %1772 = vst [vmem:[%s1064_s1] sm:$0xff] %v1767_v12  ;;  %v3526_v15 = vpop.f32.mrb[11].mxu1 }
 0x78a   : > { %v2048_v24 = vpop.f32.mrb[12].mxu1 }
 0x78b   : > { %v2049_v25 = vadd.f32 %v2048_v24, %v5369_v31  ;;  %v2050_v27 = vpop.f32.mrb[13].mxu1  ;;  %v3956_v31 = vld [vmem:[#allocation26 + $0x78] sm:$0xff]  }
 0x78c   : > { %v2051_v28 = vadd.f32 %v2050_v27, %v5371_v32  ;;  %v2052_v30 = vpop.f32.mrb[14].mxu1  ;;  %3390 = vmatprep.subr.bf16.mxu0 %v3956_v31  ;;  %v2254_v32 = vld [vmem:[%s5607_s0] sm:$0x3] }
 0x78d   : > { %v2202_v16 = vadd.f32 %v2197_v22, %v2049_v25  ;;  %v2053_v33 = vpop.f32.mrb[15].mxu1  ;;  %3391 = vmatpush3.bf16.msra.mxu0 %v3957_v43  ;;  %v2259_v44 = vrot.slane %v2254_v32, %v2196_v19  ;;  %v2263_v45 = vrot.slane %v2254_v32, %v2212_v21 }
 0x78e   : > { %v2203_v34 = vadd.f32 %v2201_v23, %v2051_v28  ;;  %3527 = vmatprep.subr.bf16.mxu0 %v4596_v0 }
 0x78f   : > { %v2216_v35 = vadd.f32 %v2209_v26, %v2202_v16 }
 0x790   : > { %v2217_v36 = vadd.f32 %v2213_v29, %v2203_v34 }
 0x791   : > { %v2218_v37 = vmax.f32 %v2216_v35, 0.0 }
 0x792   : > { %v2219_v38 = vmax.f32 %v2217_v36, 0.0 }
 0x793   : > { %v2220_v40 = vpack.c.bf16 %v2218_v37, %v2218_v37 }
 0x794   : > { %v2221_v39 = vpack.c.bf16 %v2219_v38, %v2219_v38 }
 0x796   : > { %2458 = vmatprep.mubr.bf16.mxu1 %v2221_v39 }
 0x797   : > { %2459 = vmatmul.mubr.bf16.vlgmr.msra.gmra.mrb[16].mxu1 %v2220_v40 }
 0x86a   : > { %v2460_v46 = vpop.f32.mrb[16].mxu1 }
 0x86b   : > { %v2461_v47 = vadd.f32 %v2460_v46, %v2259_v44  ;;  %v2462_v48 = vpop.f32.mrb[17].mxu1 }
 0x86c   : > { %v2463_v49 = vadd.f32 %v2462_v48, %v2263_v45  ;;  %v2464_v50 = vpop.f32.mrb[18].mxu1 }
 0x86d   : > { %v2467_v51 = vmax.f32 %v2461_v47, 0.0  ;;  %v2465_v52 = vpop.f32.mrb[19].mxu1 }
 0x86e   : > { %v2468_v53 = vmax.f32 %v2463_v49, 0.0 }
 0x86f   : > { %v2469_v56 = vpack.c.bf16 %v2467_v51, %v2467_v51 }
 0x870   : > { %v2470_v54 = vpack.c.bf16 %v2468_v53, %v2468_v53 }
 0x872   : > { %2638 = vmatprep.mubr.bf16.mxu0 %v2470_v54 }
 0x873   : > { %2639 = vmatmul.mubr.bf16.vlgmr.msra.gmra.mrb[20].mxu0 %v2469_v56 }
 0x874   : > { %3528 = vmatpush3.bf16.msra.mxu0 %v3958_v55  ;;  %3543 = vmatprep.mubr.msk.bf16.mxu0 %vm4597_vm0, %v4596_v0 }
 0x875   : > { %3529 = vmatprep.subr.bf16.mxu0 %v4596_v0 }
 0x878   : > { %3530 = vmatpush3.bf16.msra.mxu0 %v3959_v57 }
 0x879   : > { %3531 = vmatprep.subr.bf16.mxu0 %v4596_v0 }
 0x87c   : > { %3532 = vmatpush3.bf16.msra.mxu0 %v3960_v58 }
 0x87d   : > { %3533 = vmatprep.subr.bf16.mxu0 %v4596_v0 }
 0x880   : > { %3534 = vmatpush3.bf16.msra.mxu0 %v3961_v60 }
 0x881   : > { %3535 = vmatprep.subr.bf16.mxu0 %v4596_v0 }
 0x884   : > { %3536 = vmatpush3.bf16.msra.mxu0 %v3962_v61 }
 0x885   : > { %3537 = vmatprep.subr.bf16.mxu0 %v4596_v0 }
 0x888   : > { %3538 = vmatpush3.bf16.msra.mxu0 %v3963_v62 }
 0x889   : > { %3539 = vmatprep.subr.bf16.mxu0 %v4596_v0 }
 0x88c   : > { %3540 = vmatpush3.bf16.msra.mxu0 %v3964_v63 }
 0x88d   : > { %3541 = vmatprep.subr.bf16.mxu0 %v4596_v0 }
 0x890   : > { %3542 = vmatpush3.bf16.msra.mxu0 %v3965_v1 }
 0x946   : > { %v3392_v2 = vpop.f32.mrb[20].mxu0 }
 0x947   : > { %v3393_v4 = vpop.f32.mrb[21].mxu0 }
 0x948   : > { %v3394_v5 = vadd.f32 %v3393_v4, %v3392_v2  ;;  %v3395_v6 = vpop.f32.mrb[22].mxu0 }
 0x949   : > { %v3396_v8 = vpop.f32.mrb[23].mxu0 }
 0x94a   : > { %v2641_v0 = vadd.f32 %v3394_v5, %v3291_v3 }
 0x94c   : > { %v2646_v10 = vpack.c.bf16 %v2641_v0, %v2641_v0  ;;  %v2768_v11 = vrot.slane %v2641_v0, 7 }
 0x94e   : > { %v2770_v12 = vadd.f32 %v2768_v11, %v2766_v9  ;;  %3544 = vmatmul.mubr.bf16.vlgmr.msra.gmra.mrb[24].mxu0 %v2646_v10 }
 0x950   : > { %2771 = vst [vmem:[%s1092_s6 - $0x1] sm:$0x7e] %v2770_v12 }
 0x951   : > { %4483 = shalt.err (!%p4480_p0)
}
 0x952   : > { %s4484_s9 = scalar_lea.hbm %s5422_s11, 128  ;;  %s4488_s1 = scalar_lea.hbm %s5612_s27, 256 }
 0x953   : > { %p4485_p1 = scmp.ne.s32.totalorder %s5422_s11, %s4484_s9  ;;  %p4489_p9 = scmp.lt.u32.totalorder %s5422_s11, %s5612_s27 }
 0x954   : > { %p4490_p12 = scmp.lt.u32.totalorder %s4488_s1, %s4484_s9  ;;  %p4492_p2 = scmp.lt.u32.totalorder %s4484_s9, %s5422_s11 }
 0x955   : > { %p4486_p6 = pnand %p4485_p1, %p5613_p3 }
 0x956   : > { %p4491_p10 = por %p4490_p12, %p4489_p9 }
 0x957   : > { %p4487_p5 = pneg %p4486_p6 }
 0x958   : > { %p4493_p4 = por %p4492_p2, %p4491_p10 }
 0x95a   : > { %p4494_p7 = pnand %p4493_p4, %p4487_p5 }
 0x95c   : > { %4497 = shalt.err (!%p4494_p7)
}
 0x95d   : > { %3619 = dma.vmem_to_hbm [thread:$0]  (%p5613_p3), %s2802_s23, 128, %s5422_s11, %s2777_s3   ;;  %v3308_v59 = vld [vmem:[#allocation29] ss:$0 sm:$0xff] }
 0x95e   : > { %s5614_s10 = sld [smem:[#allocation70_spill]] }
 0x964   : > { %s1088_s16 = scalar_lea.vmem %s5614_s10, %s5280_s12 }
 0xa21   : > { %v2752_v13 = vpop.f32.mrb[24].mxu0 }
 0xa22   : > { %v2753_v14 = vadd.f32 %v3308_v59, %v2752_v13  ;;  %v3545_v15 = vpop.f32.mrb[25].mxu0 }
 0xa23   : > { %v2755_v17 = vpop.f32.mrb[26].mxu0 }
 0xa24   : > { %2758 = vst [vmem:[%s1088_s16] sm:$0x3f] %v2753_v14  ;;  %v3546_v18 = vpop.f32.mrb[27].mxu0 }
 0xa25 PF: > { %s5615_s15 = sld [smem:[#allocation45_spill]]  ;;  %s5616_s25 = sld [smem:[#allocation43_spill]] }
 0xa26   : > { %s5617_s2 = sld [smem:[#allocation49_spill]] }
 0xa2b   : > { %p3716_p8 = scmp.ge.s32.totalorder %s5615_s15, 2  ;;  %s2826_s18 = sand.u32 1, %s5616_s25  }
 0xa2c   : > { %p5618_p11 = scmp.ne.s32.totalorder %s5617_s2, 0  ;;  %s2827_s23 = scalar_lea.sflag [#allocation4], %s2826_s18 }
 0xa2e   : > { %p3677_p13 = pnand %p3716_p8, %p5618_p11 }
 0xa30   : > { %4555 = dma.done.wait (!%p3677_p13), %s2827_s23, 128  }
 0xa31   : > { %4557 = vsyncadd (!%p3677_p13), %s2827_s23, 4294967168  ;;  %s5619_s30 = sld [smem:[#allocation46_spill]]  ;;  %s5620_s12 = sld [smem:[#allocation44_spill]] }
 0xa32   : > { %s5621_s8 = sld [smem:[#allocation47_spill]]  ;;  %s5622_s7 = smov %s4564_s4 }
 0xa37   : > { %p48_p3 = scmp.ge.s32.totalorder %s5619_s30, 4   ;;  %s5623_s4 = smov %s5620_s12 }
 0xa39   :  { %50 = sbr.rel (!%p48_p3) target bundleno = 36 (0x24), region = 260 }
 0xa40   :  { %2846 = vsyncpa [#allocation3], 1 }
 0xa41   :  { %2848 = vsyncpa [#allocation3 + $0x1], 1 }
 0xa42   :  { %2849 = vsyncpa [#allocation6], 1 }
 0xa43   :  { %2850 = vsyncpa [#allocation9], 1 }
 0xa44   :  { %2851 = vsyncpa [#allocation12], 1 }
 0xa45   :  { %2852 = vsyncpa [#allocation15], 1 }
 0xa46   :  { %2853 = vsyncpa [#allocation18], 1 }
 0xa47   :  { %2854 = vsyncpa [#allocation21], 1 }
 0xa48   :  { %2855 = vsyncpa [#allocation24], 1 }
 0xa49   :  { %2856 = vsyncpa [#allocation27], 1 }
 0xa4a   :  { %2857 = vsyncpa [#allocation30], 1 }
 0xa4b   :  { %2858 = vsyncpa [#allocation4], 1 }
 0xa4c   :  { %2860 = vsyncpa [#allocation4 + $0x1], 1 }

</bundles_post_ra>
